<compile_context>
chip_gen: v7x
topology: tpu7x:2x2x1
jax: 0.10.0
libtpu: 0.0.40
codegen_flags: <defaults>
</compile_context>

<pallas_src>
import functools

import numpy as np

import jax
import jax.numpy as jnp
from jax.experimental import pallas as pl
from jax.experimental.pallas import tpu as pltpu


def _round_up(x, m):
    return (x + m - 1) // m * m


# ----------------------------- Pallas kernel -----------------------------

def _tc_co_kernel(*refs, W, N, C1p, C2p, T2C, cin_p, has_x3):
    if has_x3:
        (x12_ref, smask_ref, wg_ref, bg_ref, w1_ref, b1_ref, w2_ref, b2_ref,
         x3_ref, wup_ref, pmask_ref, ubias_ref, wc_ref, bc_ref,
         o_ref, taps_g_ref, taps_c_ref, feat_ref) = refs
    else:
        (x12_ref, smask_ref, wg_ref, bg_ref, w1_ref, b1_ref, w2_ref, b2_ref,
         wc_ref, bc_ref, o_ref, taps_g_ref, taps_c_ref, feat_ref) = refs

    f32 = jnp.float32
    bf16 = jnp.bfloat16

    def stack_taps(x_f32, taps_ref, rows):
        # Stage the 9 rolled + boundary-masked SAME-conv taps into a bf16 scratch so the
        # 3x3 conv becomes a single MXU contraction with K = 9*rows.
        # Rolls wrap across the folded-batch lane axis, but smask already zeroes every
        # position whose shifted read would leave its own image, so that is harmless.
        tap = 0
        for dh in (-1, 0, 1):
            for dw in (-1, 0, 1):
                s = dh * W + dw
                if s == 0:
                    xs = x_f32
                else:
                    xs = pltpu.roll(x_f32, shift=(-s) % N, axis=1) * smask_ref[tap]
                taps_ref[tap * rows:(tap + 1) * rows, :] = xs.astype(bf16)
                tap += 1

    # ---- fusion gate: conv2d(3x3) for all T timesteps as ONE matmul, sigmoid, multiply ----
    x12 = x12_ref[...]                                                   # [T2C, N] f32
    stack_taps(x12, taps_g_ref, T2C)
    g = jnp.dot(wg_ref[...], taps_g_ref[...],
                preferred_element_type=f32) + bg_ref[...]                # [T2C, N]
    fusion = jax.nn.sigmoid(g) * x12                                     # f32 VPU math

    # ---- temporal Conv3d stack: two block-banded bf16 matmuls + ReLU, then AvgPool3d ----
    h1 = jnp.maximum(
        jnp.dot(w1_ref[...], fusion.astype(bf16),
                preferred_element_type=f32) + b1_ref[...], 0.0)          # [D1*C1, N]
    h2 = jnp.maximum(
        jnp.dot(w2_ref[...], h1.astype(bf16),
                preferred_element_type=f32) + b2_ref[...], 0.0)          # [2*C1p, N]
    feat_ref[0:C1p, :] = (h2[0:C1p, :] + h2[C1p:2 * C1p, :]) * 0.5       # AvgPool3d((2,1,1))

    # ---- ConvTranspose2d(k=2, s=2) on x3: one matmul + 4 parity-masked selects ----
    if has_x3:
        parts = jnp.dot(wup_ref[...], x3_ref[...],
                        preferred_element_type=f32)                      # [4*C2p, N]
        up = ubias_ref[...]                                              # bias zeroed in pad frame
        for k in range(4):
            up = up + parts[k * C2p:(k + 1) * C2p, :] * pmask_ref[k]
        feat_ref[C1p:C1p + C2p, :] = up

    # ---- final conv2d(3x3, pad=1): one matmul, lane-dense NC(HW)-ordered output ----
    stack_taps(feat_ref[...], taps_c_ref, cin_p)
    o_ref[...] = jnp.dot(wc_ref[...], taps_c_ref[...],
                         preferred_element_type=f32) + bc_ref[...]


# ----------------------------- host wrapper -----------------------------

def init_params(key, c1, c2, cout):
    ks = jax.random.split(key, 10)

    def rnd(k, shape, scale=0.1):
        return scale * jax.random.normal(k, shape, jnp.float32)

    return {
        "w_conv_w": rnd(ks[0], (2 * c1, 2 * c1, 3, 3)),     # Conv2d(2c1, 2c1, 3, pad=1)
        "w_conv_b": rnd(ks[1], (2 * c1,)),
        "tc1_w": rnd(ks[2], (c1, 2 * c1, 3, 1, 1)),          # Conv3d(2c1, c1, (3,1,1), s=(2,1,1), p=(1,0,0))
        "tc1_b": rnd(ks[3], (c1,)),
        "tc2_w": rnd(ks[4], (c1, c1, 3, 1, 1)),              # Conv3d(c1, c1, (3,1,1))
        "tc2_b": rnd(ks[5], (c1,)),
        "up_w": rnd(ks[6], (c2, c2, 2, 2)),                  # ConvTranspose2d(c2, c2, 2, s=2) [Cin,Cout,2,2]
        "up_b": rnd(ks[7], (c2,)),
        "conv_w": rnd(ks[8], (cout, c1 + c2, 3, 3)),         # Conv2d(c1+c2, cout, 3, pad=1)
        "conv_b": rnd(ks[9], (cout,)),
    }


def tc_co_forward(params, x1, x2, x3, block_batch=None):
    B, T, C1, H, W = x1.shape
    HW = H * W
    T2C = T * 2 * C1
    assert HW % 128 == 0, "flattened spatial dim must be a multiple of 128 for lane-dense blocks"
    assert T2C % 8 == 0
    D1 = (T - 1) // 2 + 1       # Conv3d k=3 s=2 p=1 output depth
    D2 = D1 - 2                 # Conv3d k=3 s=1 output depth
    assert D2 in (2, 3), "temporal pipeline must collapse to depth 1 (squeeze(dim=2))"
    has_x3 = x3 is not None
    f32, bf16 = jnp.float32, jnp.bfloat16
    C1p = _round_up(C1, 8)

    # ---- batch folding into the lane axis: N = Bblk * H*W lanes per grid step ----
    if block_batch is None:
        block_batch = 1
        for cand in range(1, B + 1):
            # keep >=2 parallel grid steps (both v7x TensorCores busy), cap lanes at 2048
            if B % cand == 0 and B // cand >= 2 and cand * HW <= 2048:
                block_batch = cand
    Bblk = block_batch
    assert B % Bblk == 0
    nb = B // Bblk
    N = Bblk * HW

    def fold_lanes(x):   # [B, R, HW] -> [nb, R, Bblk*HW]
        R = x.shape[1]
        return x.reshape(nb, Bblk, R, HW).transpose(0, 2, 1, 3).reshape(nb, R, N)

    def tile_lanes_np(m):  # numpy [..., HW] -> [..., N]
        return np.tile(m, (1,) * (m.ndim - 1) + (Bblk,))

    # rows = (t, channel), lanes = (image-in-block, flattened spatial)
    x12 = jnp.concatenate([x1, x2], axis=2).astype(f32).reshape(B, T2C, HW)
    x12 = fold_lanes(x12)                                              # [nb, T2C, N]

    # fusion-gate conv weights, block-diagonal over T, folded over the 9 taps -> [T2C, 9*T2C]
    wg_taps = jnp.transpose(params["w_conv_w"], (2, 3, 0, 1)).reshape(9, 2 * C1, 2 * C1)
    wg_bd = jnp.einsum("st,kij->ksitj", jnp.eye(T, dtype=f32), wg_taps).reshape(9, T2C, T2C)
    wg = jnp.transpose(wg_bd, (1, 0, 2)).reshape(T2C, 9 * T2C).astype(bf16)
    bg = jnp.broadcast_to(jnp.tile(params["w_conv_b"], T).reshape(T2C, 1), (T2C, N))

    # temporal Conv3d (kt,1,1) stack as block-banded matmuls (bf16 weights)
    w1 = params["tc1_w"][:, :, :, 0, 0]                     # [C1, 2C1, 3]
    w1_band = jnp.zeros((D1 * C1, T2C), f32)
    for d in range(D1):
        for kt in range(3):
            t = 2 * d + kt - 1                              # stride 2, temporal pad 1
            if 0 <= t < T:
                w1_band = w1_band.at[d * C1:(d + 1) * C1,
                                     t * 2 * C1:(t + 1) * 2 * C1].set(w1[:, :, kt])
    w1_band = w1_band.astype(bf16)
    b1 = jnp.broadcast_to(jnp.tile(params["tc1_b"], D1).reshape(D1 * C1, 1), (D1 * C1, N))

    # only the first 2 depth slices are consumed by AvgPool3d((2,1,1)) + squeeze;
    # output blocks padded to C1p rows so all later slices are 8-sublane aligned.
    w2 = params["tc2_w"][:, :, :, 0, 0]                     # [C1, C1, 3]
    w2_band = jnp.zeros((2 * C1p, D1 * C1), f32)
    b2 = jnp.zeros((2 * C1p, 1), f32)
    for e in range(2):
        b2 = b2.at[e * C1p:e * C1p + C1, 0].set(params["tc2_b"])
        for kt in range(3):
            d = e + kt                                      # stride 1, no pad
            if d < D1:
                w2_band = w2_band.at[e * C1p:e * C1p + C1,
                                     d * C1:(d + 1) * C1].set(w2[:, :, kt])
    w2_band = w2_band.astype(bf16)
    b2 = jnp.broadcast_to(b2, (2 * C1p, N))

    # static 3x3 boundary masks (host constants), tiled Bblk times along the lane axis
    col = np.arange(HW) % W
    row = np.arange(HW) // W
    smask_np = np.zeros((9, 1, HW), np.float32)
    tap = 0
    for dh in (-1, 0, 1):
        for dw in (-1, 0, 1):
            smask_np[tap, 0] = ((row + dh >= 0) & (row + dh < H) &
                                (col + dw >= 0) & (col + dw < W))
            tap += 1
    smask = jnp.asarray(tile_lanes_np(smask_np))

    def full_spec(shape):
        return pl.BlockSpec(shape, lambda b: (0,) * len(shape))

    def per_batch_spec(shape):
        return pl.BlockSpec((None,) + shape, lambda b: (b,) + (0,) * len(shape))

    inputs = [x12, smask, wg, bg, w1_band, b1, w2_band, b2]
    in_specs = [per_batch_spec((T2C, N)), full_spec((9, 1, N)),
                full_spec((T2C, 9 * T2C)), full_spec((T2C, N)),
                full_spec((D1 * C1, T2C)), full_spec((D1 * C1, N)),
                full_spec((2 * C1p, D1 * C1)), full_spec((2 * C1p, N))]

    if has_x3:
        C2, Hs, Ws = x3.shape[1], x3.shape[2], x3.shape[3]
        C2p = _round_up(C2, 8)
        diffY, diffX = H - 2 * Hs, W - 2 * Ws
        assert diffY >= 0 and diffX >= 0
        pad_t, pad_l = diffY // 2, diffX // 2
        # nearest-neighbour replicated x3 so the transposed conv becomes 1 matmul + 4
        # parity-masked selects, zero-padded into the (H, W) frame exactly like F.pad.
        x3nn = jnp.repeat(jnp.repeat(x3.astype(f32), 2, axis=2), 2, axis=3)
        x3nn = jnp.pad(x3nn, ((0, 0), (0, 0),
                              (pad_t, diffY - pad_t), (pad_l, diffX - pad_l)))
        x3nn = x3nn.reshape(B, C2, HW)
        C2k = _round_up(C2, 8)                              # matmul K dim, 8-sublane padded
        if C2k != C2:
            x3nn = jnp.pad(x3nn, ((0, 0), (0, C2k - C2), (0, 0)))
        x3nn = fold_lanes(x3nn).astype(bf16)                 # [nb, C2k, N]

        wup_t = jnp.transpose(params["up_w"], (2, 3, 1, 0))  # [2, 2, Cout, Cin]
        wup = jnp.zeros((4 * C2p, C2k), f32)
        for dy in range(2):
            for dx in range(2):
                k = 2 * dy + dx
                wup = wup.at[k * C2p:k * C2p + C2, 0:C2].set(wup_t[dy, dx])
        wup = wup.astype(bf16)

        hu, wu = row - pad_t, col - pad_l
        uvalid = (hu >= 0) & (hu < 2 * Hs) & (wu >= 0) & (wu < 2 * Ws)
        pmask_np = np.zeros((4, 1, HW), np.float32)
        for dy in range(2):
            for dx in range(2):
                pmask_np[2 * dy + dx, 0] = uvalid & (hu % 2 == dy) & (wu % 2 == dx)
        pmask = jnp.asarray(tile_lanes_np(pmask_np))

        ubias = jnp.zeros((C2p, HW), f32).at[0:C2, :].set(
            params["up_b"][:, None] * jnp.asarray(uvalid, jnp.float32)[None, :])
        ubias = jnp.tile(ubias, (1, Bblk))

        inputs += [x3nn, wup, pmask, ubias]
        in_specs += [per_batch_spec((C2k, N)), full_spec((4 * C2p, C2k)),
                     full_spec((4, 1, N)), full_spec((C2p, N))]
        cin_p = C1p + C2p
    else:
        C2, C2p = 0, 0
        cin_p = C1p

    # final 3x3 conv: weights padded to the (C1p | C2p) feat row layout and folded over taps
    Cout = params["conv_w"].shape[0]
    wpad = jnp.zeros((Cout, cin_p, 3, 3), f32)
    wpad = wpad.at[:, 0:C1].set(params["conv_w"][:, 0:C1])
    if has_x3:
        wpad = wpad.at[:, C1p:C1p + C2].set(params["conv_w"][:, C1:C1 + C2])
    wc_taps = jnp.transpose(wpad, (2, 3, 0, 1)).reshape(9, Cout, cin_p)
    wc = jnp.transpose(wc_taps, (1, 0, 2)).reshape(Cout, 9 * cin_p).astype(bf16)
    bc = jnp.broadcast_to(params["conv_b"].reshape(Cout, 1), (Cout, N))
    inputs += [wc, bc]
    in_specs += [full_spec((Cout, 9 * cin_p)), full_spec((Cout, N))]

    kernel = functools.partial(_tc_co_kernel, W=W, N=N, C1p=C1p, C2p=C2p,
                               T2C=T2C, cin_p=cin_p, has_x3=has_x3)

    out = pl.pallas_call(
        kernel,
        out_shape=jax.ShapeDtypeStruct((nb, Cout, N), f32),
        grid_spec=pltpu.PrefetchScalarGridSpec(
            num_scalar_prefetch=0,
            grid=(nb,),
            in_specs=in_specs,
            out_specs=pl.BlockSpec((None, Cout, N), lambda b: (b, 0, 0)),
            scratch_shapes=[pltpu.VMEM((9 * T2C, N), bf16),      # stacked gate-conv taps
                            pltpu.VMEM((9 * cin_p, N), bf16),    # stacked final-conv taps
                            pltpu.VMEM((cin_p, N), f32)]),       # concatenated feature map
        compiler_params=pltpu.CompilerParams(dimension_semantics=("parallel",)),
    )(*inputs)

    # undo the lane-axis batch folding; rows are already in NCHW-flat order
    return out.reshape(nb, Cout, Bblk, HW).transpose(0, 2, 1, 3).reshape(B, Cout, H, W)


# ----------------------------- pure-JAX reference (for the self-check) -----------------------------

def _ref_forward(params, x1, x2, x3):
    B, T, C1, H, W = x1.shape
    x12 = jnp.concatenate([x1, x2], axis=2).reshape(B * T, 2 * C1, H, W)
    g = jax.lax.conv_general_dilated(x12, params["w_conv_w"], (1, 1), "SAME",
                                     dimension_numbers=("NCHW", "OIHW", "NCHW"))
    g = jax.nn.sigmoid(g + params["w_conv_b"][None, :, None, None])
    fusion = (g * x12).reshape(B, T, 2 * C1, H, W).transpose(0, 2, 1, 3, 4)
    h1 = jax.lax.conv_general_dilated(fusion, params["tc1_w"], (2, 1, 1),
                                      ((1, 1), (0, 0), (0, 0)),
                                      dimension_numbers=("NCDHW", "OIDHW", "NCDHW"))
    h1 = jnp.maximum(h1 + params["tc1_b"][None, :, None, None, None], 0.0)
    h2 = jax.lax.conv_general_dilated(h1, params["tc2_w"], (1, 1, 1),
                                      ((0, 0), (0, 0), (0, 0)),
                                      dimension_numbers=("NCDHW", "OIDHW", "NCDHW"))
    h2 = jnp.maximum(h2 + params["tc2_b"][None, :, None, None, None], 0.0)
    out = 0.5 * (h2[:, :, 0] + h2[:, :, 1])                  # AvgPool3d((2,1,1)) + squeeze
    if x3 is not None:
        u = jnp.einsum("bchw,cdkl->bdhkwl", x3, params["up_w"])
        Bx, C2, Hs, _, Ws, _ = u.shape
        u = u.reshape(Bx, C2, 2 * Hs, 2 * Ws) + params["up_b"][None, :, None, None]
        dY, dX = H - 2 * Hs, W - 2 * Ws
        u = jnp.pad(u, ((0, 0), (0, 0), (dY // 2, dY - dY // 2), (dX // 2, dX - dX // 2)))
        out = jnp.concatenate([out, u], axis=1)
    res = jax.lax.conv_general_dilated(out, params["conv_w"], (1, 1), "SAME",
                                       dimension_numbers=("NCHW", "OIHW", "NCHW"))
    return res + params["conv_b"][None, :, None, None]


if __name__ == "__main__":
    B, T, C1, C2, Cout, H, W = 2, 8, 4, 4, 8, 16, 16

    key = jax.random.PRNGKey(0)
    k1, k2, k3, kp = jax.random.split(key, 4)
    x1 = jax.random.normal(k1, (B, T, C1, H, W), jnp.float32)
    x2 = jax.random.normal(k2, (B, T, C1, H, W), jnp.float32)
    x3 = jax.random.normal(k3, (B, C2, H // 2, W // 2), jnp.float32)
    params = init_params(kp, C1, C2, Cout)

    out = jax.jit(tc_co_forward)(params, x1, x2, x3)
    jax.block_until_ready(out)
    assert out.shape == (B, Cout, H, W), out.shape

    # numerical sanity-check vs a pure-JAX/XLA reference of the PyTorch module
    # (5e-2 rel-L2 tolerance accounts for the bf16 MXU operands)
    ref = _ref_forward(params, x1, x2, x3)
    rel = jnp.linalg.norm(out - ref) / (jnp.linalg.norm(ref) + 1e-12)
    assert float(rel) < 5e-2, f"mismatch vs reference: rel L2 err = {float(rel):.3e}"

    print("KERNEL_OK")
</pallas_src>

<mosaic_0001>
module attributes {stable_mosaic.version = 11 : i64} {
  func.func @_tc_co_kernel(%arg0: i32, %arg1: memref<1x64x256xf32, #tpu.memory_space<vmem>>, %arg2: memref<9x1x256xf32, #tpu.memory_space<vmem>>, %arg3: memref<64x576xbf16, #tpu.memory_space<vmem>>, %arg4: memref<64x256xf32, #tpu.memory_space<vmem>>, %arg5: memref<16x64xbf16, #tpu.memory_space<vmem>>, %arg6: memref<16x256xf32, #tpu.memory_space<vmem>>, %arg7: memref<16x16xbf16, #tpu.memory_space<vmem>>, %arg8: memref<16x256xf32, #tpu.memory_space<vmem>>, %arg9: memref<1x8x256xbf16, #tpu.memory_space<vmem>>, %arg10: memref<32x8xbf16, #tpu.memory_space<vmem>>, %arg11: memref<4x1x256xf32, #tpu.memory_space<vmem>>, %arg12: memref<8x256xf32, #tpu.memory_space<vmem>>, %arg13: memref<8x144xbf16, #tpu.memory_space<vmem>>, %arg14: memref<8x256xf32, #tpu.memory_space<vmem>>, %arg15: memref<1x8x256xf32, #tpu.memory_space<vmem>>, %arg16: memref<576x256xbf16, #tpu.memory_space<vmem>>, %arg17: memref<144x256xbf16, #tpu.memory_space<vmem>>, %arg18: memref<16x256xf32, #tpu.memory_space<vmem>>) attributes {dimension_semantics = [#tpu.dimension_semantics<parallel>], iteration_bounds = array<i64: 2>, scalar_prefetch = 0 : i64, scratch_operands = 3 : i64, tpu.core_type = #tpu.core_type<tc>, window_params = [{transform_indices = @transform_0, window_bounds = array<i64: 1, 64, 256>}, {pipeline_mode = #tpu.pipeline_mode<synchronous>, transform_indices = @transform_1, window_bounds = array<i64: 9, 1, 256>}, {pipeline_mode = #tpu.pipeline_mode<synchronous>, transform_indices = @transform_2, window_bounds = array<i64: 64, 576>}, {pipeline_mode = #tpu.pipeline_mode<synchronous>, transform_indices = @transform_3, window_bounds = array<i64: 64, 256>}, {pipeline_mode = #tpu.pipeline_mode<synchronous>, transform_indices = @transform_4, window_bounds = array<i64: 16, 64>}, {pipeline_mode = #tpu.pipeline_mode<synchronous>, transform_indices = @transform_5, window_bounds = array<i64: 16, 256>}, {pipeline_mode = #tpu.pipeline_mode<synchronous>, transform_indices = @transform_6, window_bounds = array<i64: 16, 16>}, {pipeline_mode = #tpu.pipeline_mode<synchronous>, transform_indices = @transform_7, window_bounds = array<i64: 16, 256>}, {transform_indices = @transform_8, window_bounds = array<i64: 1, 8, 256>}, {pipeline_mode = #tpu.pipeline_mode<synchronous>, transform_indices = @transform_9, window_bounds = array<i64: 32, 8>}, {pipeline_mode = #tpu.pipeline_mode<synchronous>, transform_indices = @transform_10, window_bounds = array<i64: 4, 1, 256>}, {pipeline_mode = #tpu.pipeline_mode<synchronous>, transform_indices = @transform_11, window_bounds = array<i64: 8, 256>}, {pipeline_mode = #tpu.pipeline_mode<synchronous>, transform_indices = @transform_12, window_bounds = array<i64: 8, 144>}, {pipeline_mode = #tpu.pipeline_mode<synchronous>, transform_indices = @transform_13, window_bounds = array<i64: 8, 256>}, {transform_indices = @transform_14, window_bounds = array<i64: 1, 8, 256>}]} {
    %c0 = arith.constant 0 : index
    %c0_0 = arith.constant 0 : index
    %c0_1 = arith.constant 0 : index
    %0 = vector.load %arg1[%c0, %c0_0, %c0_1] : memref<1x64x256xf32, #tpu.memory_space<vmem>>, vector<1x64x256xf32>
    %1 = vector.shape_cast %0 : vector<1x64x256xf32> to vector<64x256xf32>
    %c17_i32 = arith.constant 17 : i32
    %2 = tpu.dynamic_rotate %1 by %c17_i32 dim 1 : vector<64x256xf32>, i32 -> vector<64x256xf32>
    %c0_2 = arith.constant 0 : index
    %c0_3 = arith.constant 0 : index
    %c0_4 = arith.constant 0 : index
    %3 = vector.load %arg2[%c0_2, %c0_3, %c0_4] : memref<9x1x256xf32, #tpu.memory_space<vmem>>, vector<1x1x256xf32>
    %4 = vector.shape_cast %3 : vector<1x1x256xf32> to vector<1x256xf32>
    %5 = vector.broadcast %4 : vector<1x256xf32> to vector<64x256xf32>
    %6 = arith.mulf %2, %5 : vector<64x256xf32>
    %7 = arith.truncf %6 : vector<64x256xf32> to vector<64x256xbf16>
    %c0_5 = arith.constant 0 : index
    %c0_6 = arith.constant 0 : index
    %8 = vector.load %arg16[%c0_5, %c0_6] : memref<576x256xbf16, #tpu.memory_space<vmem>>, vector<64x256xbf16>
    tpu.vector_store %arg16[%c0_5, %c0_6], %7 {strides = array<i32>} : memref<576x256xbf16, #tpu.memory_space<vmem>>, vector<64x256xbf16>,
    %c16_i32 = arith.constant 16 : i32
    %9 = tpu.dynamic_rotate %1 by %c16_i32 dim 1 : vector<64x256xf32>, i32 -> vector<64x256xf32>
    %c1 = arith.constant 1 : index
    %c0_7 = arith.constant 0 : index
    %c0_8 = arith.constant 0 : index
    %10 = vector.load %arg2[%c1, %c0_7, %c0_8] : memref<9x1x256xf32, #tpu.memory_space<vmem>>, vector<1x1x256xf32>
    %11 = vector.shape_cast %10 : vector<1x1x256xf32> to vector<1x256xf32>
    %12 = vector.broadcast %11 : vector<1x256xf32> to vector<64x256xf32>
    %13 = arith.mulf %9, %12 : vector<64x256xf32>
    %14 = arith.truncf %13 : vector<64x256xf32> to vector<64x256xbf16>
    %c64 = arith.constant 64 : index
    %c0_9 = arith.constant 0 : index
    %15 = vector.load %arg16[%c64, %c0_9] : memref<576x256xbf16, #tpu.memory_space<vmem>>, vector<64x256xbf16>
    tpu.vector_store %arg16[%c64, %c0_9], %14 {strides = array<i32>} : memref<576x256xbf16, #tpu.memory_space<vmem>>, vector<64x256xbf16>,
    %c15_i32 = arith.constant 15 : i32
    %16 = tpu.dynamic_rotate %1 by %c15_i32 dim 1 : vector<64x256xf32>, i32 -> vector<64x256xf32>
    %c2 = arith.constant 2 : index
    %c0_10 = arith.constant 0 : index
    %c0_11 = arith.constant 0 : index
    %17 = vector.load %arg2[%c2, %c0_10, %c0_11] : memref<9x1x256xf32, #tpu.memory_space<vmem>>, vector<1x1x256xf32>
    %18 = vector.shape_cast %17 : vector<1x1x256xf32> to vector<1x256xf32>
    %19 = vector.broadcast %18 : vector<1x256xf32> to vector<64x256xf32>
    %20 = arith.mulf %16, %19 : vector<64x256xf32>
    %21 = arith.truncf %20 : vector<64x256xf32> to vector<64x256xbf16>
    %c128 = arith.constant 128 : index
    %c0_12 = arith.constant 0 : index
    %22 = vector.load %arg16[%c128, %c0_12] : memref<576x256xbf16, #tpu.memory_space<vmem>>, vector<64x256xbf16>
    tpu.vector_store %arg16[%c128, %c0_12], %21 {strides = array<i32>} : memref<576x256xbf16, #tpu.memory_space<vmem>>, vector<64x256xbf16>,
    %c1_i32 = arith.constant 1 : i32
    %23 = tpu.dynamic_rotate %1 by %c1_i32 dim 1 : vector<64x256xf32>, i32 -> vector<64x256xf32>
    %c3 = arith.constant 3 : index
    %c0_13 = arith.constant 0 : index
    %c0_14 = arith.constant 0 : index
    %24 = vector.load %arg2[%c3, %c0_13, %c0_14] : memref<9x1x256xf32, #tpu.memory_space<vmem>>, vector<1x1x256xf32>
    %25 = vector.shape_cast %24 : vector<1x1x256xf32> to vector<1x256xf32>
    %26 = vector.broadcast %25 : vector<1x256xf32> to vector<64x256xf32>
    %27 = arith.mulf %23, %26 : vector<64x256xf32>
    %28 = arith.truncf %27 : vector<64x256xf32> to vector<64x256xbf16>
    %c192 = arith.constant 192 : index
    %c0_15 = arith.constant 0 : index
    %29 = vector.load %arg16[%c192, %c0_15] : memref<576x256xbf16, #tpu.memory_space<vmem>>, vector<64x256xbf16>
    tpu.vector_store %arg16[%c192, %c0_15], %28 {strides = array<i32>} : memref<576x256xbf16, #tpu.memory_space<vmem>>, vector<64x256xbf16>,
    %30 = arith.truncf %1 : vector<64x256xf32> to vector<64x256xbf16>
    %c256 = arith.constant 256 : index
    %c0_16 = arith.constant 0 : index
    %31 = vector.load %arg16[%c256, %c0_16] : memref<576x256xbf16, #tpu.memory_space<vmem>>, vector<64x256xbf16>
    tpu.vector_store %arg16[%c256, %c0_16], %30 {strides = array<i32>} : memref<576x256xbf16, #tpu.memory_space<vmem>>, vector<64x256xbf16>,
    %c255_i32 = arith.constant 255 : i32
    %32 = tpu.dynamic_rotate %1 by %c255_i32 dim 1 : vector<64x256xf32>, i32 -> vector<64x256xf32>
    %c5 = arith.constant 5 : index
    %c0_17 = arith.constant 0 : index
    %c0_18 = arith.constant 0 : index
    %33 = vector.load %arg2[%c5, %c0_17, %c0_18] : memref<9x1x256xf32, #tpu.memory_space<vmem>>, vector<1x1x256xf32>
    %34 = vector.shape_cast %33 : vector<1x1x256xf32> to vector<1x256xf32>
    %35 = vector.broadcast %34 : vector<1x256xf32> to vector<64x256xf32>
    %36 = arith.mulf %32, %35 : vector<64x256xf32>
    %37 = arith.truncf %36 : vector<64x256xf32> to vector<64x256xbf16>
    %c320 = arith.constant 320 : index
    %c0_19 = arith.constant 0 : index
    %38 = vector.load %arg16[%c320, %c0_19] : memref<576x256xbf16, #tpu.memory_space<vmem>>, vector<64x256xbf16>
    tpu.vector_store %arg16[%c320, %c0_19], %37 {strides = array<i32>} : memref<576x256xbf16, #tpu.memory_space<vmem>>, vector<64x256xbf16>,
    %c241_i32 = arith.constant 241 : i32
    %39 = tpu.dynamic_rotate %1 by %c241_i32 dim 1 : vector<64x256xf32>, i32 -> vector<64x256xf32>
    %c6 = arith.constant 6 : index
    %c0_20 = arith.constant 0 : index
    %c0_21 = arith.constant 0 : index
    %40 = vector.load %arg2[%c6, %c0_20, %c0_21] : memref<9x1x256xf32, #tpu.memory_space<vmem>>, vector<1x1x256xf32>
    %41 = vector.shape_cast %40 : vector<1x1x256xf32> to vector<1x256xf32>
    %42 = vector.broadcast %41 : vector<1x256xf32> to vector<64x256xf32>
    %43 = arith.mulf %39, %42 : vector<64x256xf32>
    %44 = arith.truncf %43 : vector<64x256xf32> to vector<64x256xbf16>
    %c384 = arith.constant 384 : index
    %c0_22 = arith.constant 0 : index
    %45 = vector.load %arg16[%c384, %c0_22] : memref<576x256xbf16, #tpu.memory_space<vmem>>, vector<64x256xbf16>
    tpu.vector_store %arg16[%c384, %c0_22], %44 {strides = array<i32>} : memref<576x256xbf16, #tpu.memory_space<vmem>>, vector<64x256xbf16>,
    %c240_i32 = arith.constant 240 : i32
    %46 = tpu.dynamic_rotate %1 by %c240_i32 dim 1 : vector<64x256xf32>, i32 -> vector<64x256xf32>
    %c7 = arith.constant 7 : index
    %c0_23 = arith.constant 0 : index
    %c0_24 = arith.constant 0 : index
    %47 = vector.load %arg2[%c7, %c0_23, %c0_24] : memref<9x1x256xf32, #tpu.memory_space<vmem>>, vector<1x1x256xf32>
    %48 = vector.shape_cast %47 : vector<1x1x256xf32> to vector<1x256xf32>
    %49 = vector.broadcast %48 : vector<1x256xf32> to vector<64x256xf32>
    %50 = arith.mulf %46, %49 : vector<64x256xf32>
    %51 = arith.truncf %50 : vector<64x256xf32> to vector<64x256xbf16>
    %c448 = arith.constant 448 : index
    %c0_25 = arith.constant 0 : index
    %52 = vector.load %arg16[%c448, %c0_25] : memref<576x256xbf16, #tpu.memory_space<vmem>>, vector<64x256xbf16>
    tpu.vector_store %arg16[%c448, %c0_25], %51 {strides = array<i32>} : memref<576x256xbf16, #tpu.memory_space<vmem>>, vector<64x256xbf16>,
    %c239_i32 = arith.constant 239 : i32
    %53 = tpu.dynamic_rotate %1 by %c239_i32 dim 1 : vector<64x256xf32>, i32 -> vector<64x256xf32>
    %c8 = arith.constant 8 : index
    %c0_26 = arith.constant 0 : index
    %c0_27 = arith.constant 0 : index
    %54 = vector.load %arg2[%c8, %c0_26, %c0_27] : memref<9x1x256xf32, #tpu.memory_space<vmem>>, vector<1x1x256xf32>
    %55 = vector.shape_cast %54 : vector<1x1x256xf32> to vector<1x256xf32>
    %56 = vector.broadcast %55 : vector<1x256xf32> to vector<64x256xf32>
    %57 = arith.mulf %53, %56 : vector<64x256xf32>
    %58 = arith.truncf %57 : vector<64x256xf32> to vector<64x256xbf16>
    %c512 = arith.constant 512 : index
    %c0_28 = arith.constant 0 : index
    %59 = vector.load %arg16[%c512, %c0_28] : memref<576x256xbf16, #tpu.memory_space<vmem>>, vector<64x256xbf16>
    tpu.vector_store %arg16[%c512, %c0_28], %58 {strides = array<i32>} : memref<576x256xbf16, #tpu.memory_space<vmem>>, vector<64x256xbf16>,
    %c0_29 = arith.constant 0 : index
    %c0_30 = arith.constant 0 : index
    %60 = vector.load %arg3[%c0_29, %c0_30] : memref<64x576xbf16, #tpu.memory_space<vmem>>, vector<64x576xbf16>
    %c0_31 = arith.constant 0 : index
    %c0_32 = arith.constant 0 : index
    %61 = vector.load %arg16[%c0_31, %c0_32] : memref<576x256xbf16, #tpu.memory_space<vmem>>, vector<576x256xbf16>
    %cst = arith.constant dense<0.000000e+00> : vector<64x256xf32>
    %62 = tpu.matmul %60, %61, %cst {dimension_numbers = #tpu.dot_dimension_numbers<[1], [0], [0], [1], [0, 0, 1, 1], [], []>} : vector<64x576xbf16>, vector<576x256xbf16>, vector<64x256xf32> -> vector<64x256xf32>
    %c0_33 = arith.constant 0 : index
    %c0_34 = arith.constant 0 : index
    %63 = vector.load %arg4[%c0_33, %c0_34] : memref<64x256xf32, #tpu.memory_space<vmem>>, vector<64x256xf32>
    %64 = arith.addf %62, %63 : vector<64x256xf32>
    %65 = arith.negf %64 : vector<64x256xf32>
    %66 = math.exp %65 : vector<64x256xf32>
    %cst_35 = arith.constant 1.000000e+00 : f32
    %67 = vector.broadcast %cst_35 : f32 to vector<64x256xf32>
    %68 = arith.addf %67, %66 : vector<64x256xf32>
    %69 = arith.divf %67, %68 : vector<64x256xf32>
    %70 = arith.mulf %69, %1 : vector<64x256xf32>
    %c0_36 = arith.constant 0 : index
    %c0_37 = arith.constant 0 : index
    %71 = vector.load %arg5[%c0_36, %c0_37] : memref<16x64xbf16, #tpu.memory_space<vmem>>, vector<16x64xbf16>
    %72 = arith.truncf %70 : vector<64x256xf32> to vector<64x256xbf16>
    %cst_38 = arith.constant dense<0.000000e+00> : vector<16x256xf32>
    %73 = tpu.matmul %71, %72, %cst_38 {dimension_numbers = #tpu.dot_dimension_numbers<[1], [0], [0], [1], [0, 0, 1, 1], [], []>} : vector<16x64xbf16>, vector<64x256xbf16>, vector<16x256xf32> -> vector<16x256xf32>
    %c0_39 = arith.constant 0 : index
    %c0_40 = arith.constant 0 : index
    %74 = vector.load %arg6[%c0_39, %c0_40] : memref<16x256xf32, #tpu.memory_space<vmem>>, vector<16x256xf32>
    %75 = arith.addf %73, %74 : vector<16x256xf32>
    %cst_41 = arith.constant 0.000000e+00 : f32
    %76 = vector.broadcast %cst_41 : f32 to vector<16x256xf32>
    %77 = arith.maximumf %75, %76 : vector<16x256xf32>
    %c0_42 = arith.constant 0 : index
    %c0_43 = arith.constant 0 : index
    %78 = vector.load %arg7[%c0_42, %c0_43] : memref<16x16xbf16, #tpu.memory_space<vmem>>, vector<16x16xbf16>
    %79 = arith.truncf %77 : vector<16x256xf32> to vector<16x256xbf16>
    %cst_44 = arith.constant dense<0.000000e+00> : vector<16x256xf32>
    %80 = tpu.matmul %78, %79, %cst_44 {dimension_numbers = #tpu.dot_dimension_numbers<[1], [0], [0], [1], [0, 0, 1, 1], [], []>} : vector<16x16xbf16>, vector<16x256xbf16>, vector<16x256xf32> -> vector<16x256xf32>
    %c0_45 = arith.constant 0 : index
    %c0_46 = arith.constant 0 : index
    %81 = vector.load %arg8[%c0_45, %c0_46] : memref<16x256xf32, #tpu.memory_space<vmem>>, vector<16x256xf32>
    %82 = arith.addf %80, %81 : vector<16x256xf32>
    %cst_47 = arith.constant 0.000000e+00 : f32
    %83 = vector.broadcast %cst_47 : f32 to vector<16x256xf32>
    %84 = arith.maximumf %82, %83 : vector<16x256xf32>
    %85 = vector.extract_strided_slice %84 {offsets = [0, 0], sizes = [8, 256], strides = [1, 1]} : vector<16x256xf32> to vector<8x256xf32>
    %86 = vector.extract_strided_slice %84 {offsets = [8, 0], sizes = [8, 256], strides = [1, 1]} : vector<16x256xf32> to vector<8x256xf32>
    %87 = arith.addf %85, %86 : vector<8x256xf32>
    %cst_48 = arith.constant 5.000000e-01 : f32
    %88 = vector.broadcast %cst_48 : f32 to vector<8x256xf32>
    %89 = arith.mulf %87, %88 : vector<8x256xf32>
    %c0_49 = arith.constant 0 : index
    %c0_50 = arith.constant 0 : index
    %90 = vector.load %arg18[%c0_49, %c0_50] : memref<16x256xf32, #tpu.memory_space<vmem>>, vector<8x256xf32>
    tpu.vector_store %arg18[%c0_49, %c0_50], %89 {strides = array<i32>} : memref<16x256xf32, #tpu.memory_space<vmem>>, vector<8x256xf32>,
    %c0_51 = arith.constant 0 : index
    %c0_52 = arith.constant 0 : index
    %91 = vector.load %arg10[%c0_51, %c0_52] : memref<32x8xbf16, #tpu.memory_space<vmem>>, vector<32x8xbf16>
    %c0_53 = arith.constant 0 : index
    %c0_54 = arith.constant 0 : index
    %c0_55 = arith.constant 0 : index
    %92 = vector.load %arg9[%c0_53, %c0_54, %c0_55] : memref<1x8x256xbf16, #tpu.memory_space<vmem>>, vector<1x8x256xbf16>
    %93 = vector.shape_cast %92 : vector<1x8x256xbf16> to vector<8x256xbf16>
    %cst_56 = arith.constant dense<0.000000e+00> : vector<32x256xf32>
    %94 = tpu.matmul %91, %93, %cst_56 {dimension_numbers = #tpu.dot_dimension_numbers<[1], [0], [0], [1], [0, 0, 1, 1], [], []>} : vector<32x8xbf16>, vector<8x256xbf16>, vector<32x256xf32> -> vector<32x256xf32>
    %c0_57 = arith.constant 0 : index
    %c0_58 = arith.constant 0 : index
    %95 = vector.load %arg12[%c0_57, %c0_58] : memref<8x256xf32, #tpu.memory_space<vmem>>, vector<8x256xf32>
    %96 = vector.extract_strided_slice %94 {offsets = [0, 0], sizes = [8, 256], strides = [1, 1]} : vector<32x256xf32> to vector<8x256xf32>
    %c0_59 = arith.constant 0 : index
    %c0_60 = arith.constant 0 : index
    %c0_61 = arith.constant 0 : index
    %97 = vector.load %arg11[%c0_59, %c0_60, %c0_61] : memref<4x1x256xf32, #tpu.memory_space<vmem>>, vector<1x1x256xf32>
    %98 = vector.shape_cast %97 : vector<1x1x256xf32> to vector<1x256xf32>
    %99 = vector.broadcast %98 : vector<1x256xf32> to vector<8x256xf32>
    %100 = arith.mulf %96, %99 : vector<8x256xf32>
    %101 = arith.addf %95, %100 : vector<8x256xf32>
    %102 = vector.extract_strided_slice %94 {offsets = [8, 0], sizes = [8, 256], strides = [1, 1]} : vector<32x256xf32> to vector<8x256xf32>
    %c1_62 = arith.constant 1 : index
    %c0_63 = arith.constant 0 : index
    %c0_64 = arith.constant 0 : index
    %103 = vector.load %arg11[%c1_62, %c0_63, %c0_64] : memref<4x1x256xf32, #tpu.memory_space<vmem>>, vector<1x1x256xf32>
    %104 = vector.shape_cast %103 : vector<1x1x256xf32> to vector<1x256xf32>
    %105 = vector.broadcast %104 : vector<1x256xf32> to vector<8x256xf32>
    %106 = arith.mulf %102, %105 : vector<8x256xf32>
    %107 = arith.addf %101, %106 : vector<8x256xf32>
    %108 = vector.extract_strided_slice %94 {offsets = [16, 0], sizes = [8, 256], strides = [1, 1]} : vector<32x256xf32> to vector<8x256xf32>
    %c2_65 = arith.constant 2 : index
    %c0_66 = arith.constant 0 : index
    %c0_67 = arith.constant 0 : index
    %109 = vector.load %arg11[%c2_65, %c0_66, %c0_67] : memref<4x1x256xf32, #tpu.memory_space<vmem>>, vector<1x1x256xf32>
    %110 = vector.shape_cast %109 : vector<1x1x256xf32> to vector<1x256xf32>
    %111 = vector.broadcast %110 : vector<1x256xf32> to vector<8x256xf32>
    %112 = arith.mulf %108, %111 : vector<8x256xf32>
    %113 = arith.addf %107, %112 : vector<8x256xf32>
    %114 = vector.extract_strided_slice %94 {offsets = [24, 0], sizes = [8, 256], strides = [1, 1]} : vector<32x256xf32> to vector<8x256xf32>
    %c3_68 = arith.constant 3 : index
    %c0_69 = arith.constant 0 : index
    %c0_70 = arith.constant 0 : index
    %115 = vector.load %arg11[%c3_68, %c0_69, %c0_70] : memref<4x1x256xf32, #tpu.memory_space<vmem>>, vector<1x1x256xf32>
    %116 = vector.shape_cast %115 : vector<1x1x256xf32> to vector<1x256xf32>
    %117 = vector.broadcast %116 : vector<1x256xf32> to vector<8x256xf32>
    %118 = arith.mulf %114, %117 : vector<8x256xf32>
    %119 = arith.addf %113, %118 : vector<8x256xf32>
    %c8_71 = arith.constant 8 : index
    %c0_72 = arith.constant 0 : index
    %120 = vector.load %arg18[%c8_71, %c0_72] : memref<16x256xf32, #tpu.memory_space<vmem>>, vector<8x256xf32>
    tpu.vector_store %arg18[%c8_71, %c0_72], %119 {strides = array<i32>} : memref<16x256xf32, #tpu.memory_space<vmem>>, vector<8x256xf32>,
    %c0_73 = arith.constant 0 : index
    %c0_74 = arith.constant 0 : index
    %121 = vector.load %arg18[%c0_73, %c0_74] : memref<16x256xf32, #tpu.memory_space<vmem>>, vector<16x256xf32>
    %c17_i32_75 = arith.constant 17 : i32
    %122 = tpu.dynamic_rotate %121 by %c17_i32_75 dim 1 : vector<16x256xf32>, i32 -> vector<16x256xf32>
    %c0_76 = arith.constant 0 : index
    %c0_77 = arith.constant 0 : index
    %c0_78 = arith.constant 0 : index
    %123 = vector.load %arg2[%c0_76, %c0_77, %c0_78] : memref<9x1x256xf32, #tpu.memory_space<vmem>>, vector<1x1x256xf32>
    %124 = vector.shape_cast %123 : vector<1x1x256xf32> to vector<1x256xf32>
    %125 = vector.broadcast %124 : vector<1x256xf32> to vector<16x256xf32>
    %126 = arith.mulf %122, %125 : vector<16x256xf32>
    %127 = arith.truncf %126 : vector<16x256xf32> to vector<16x256xbf16>
    %c0_79 = arith.constant 0 : index
    %c0_80 = arith.constant 0 : index
    %128 = vector.load %arg17[%c0_79, %c0_80] : memref<144x256xbf16, #tpu.memory_space<vmem>>, vector<16x256xbf16>
    tpu.vector_store %arg17[%c0_79, %c0_80], %127 {strides = array<i32>} : memref<144x256xbf16, #tpu.memory_space<vmem>>, vector<16x256xbf16>,
    %c16_i32_81 = arith.constant 16 : i32
    %129 = tpu.dynamic_rotate %121 by %c16_i32_81 dim 1 : vector<16x256xf32>, i32 -> vector<16x256xf32>
    %c1_82 = arith.constant 1 : index
    %c0_83 = arith.constant 0 : index
    %c0_84 = arith.constant 0 : index
    %130 = vector.load %arg2[%c1_82, %c0_83, %c0_84] : memref<9x1x256xf32, #tpu.memory_space<vmem>>, vector<1x1x256xf32>
    %131 = vector.shape_cast %130 : vector<1x1x256xf32> to vector<1x256xf32>
    %132 = vector.broadcast %131 : vector<1x256xf32> to vector<16x256xf32>
    %133 = arith.mulf %129, %132 : vector<16x256xf32>
    %134 = arith.truncf %133 : vector<16x256xf32> to vector<16x256xbf16>
    %c16 = arith.constant 16 : index
    %c0_85 = arith.constant 0 : index
    %135 = vector.load %arg17[%c16, %c0_85] : memref<144x256xbf16, #tpu.memory_space<vmem>>, vector<16x256xbf16>
    tpu.vector_store %arg17[%c16, %c0_85], %134 {strides = array<i32>} : memref<144x256xbf16, #tpu.memory_space<vmem>>, vector<16x256xbf16>,
    %c15_i32_86 = arith.constant 15 : i32
    %136 = tpu.dynamic_rotate %121 by %c15_i32_86 dim 1 : vector<16x256xf32>, i32 -> vector<16x256xf32>
    %c2_87 = arith.constant 2 : index
    %c0_88 = arith.constant 0 : index
    %c0_89 = arith.constant 0 : index
    %137 = vector.load %arg2[%c2_87, %c0_88, %c0_89] : memref<9x1x256xf32, #tpu.memory_space<vmem>>, vector<1x1x256xf32>
    %138 = vector.shape_cast %137 : vector<1x1x256xf32> to vector<1x256xf32>
    %139 = vector.broadcast %138 : vector<1x256xf32> to vector<16x256xf32>
    %140 = arith.mulf %136, %139 : vector<16x256xf32>
    %141 = arith.truncf %140 : vector<16x256xf32> to vector<16x256xbf16>
    %c32 = arith.constant 32 : index
    %c0_90 = arith.constant 0 : index
    %142 = vector.load %arg17[%c32, %c0_90] : memref<144x256xbf16, #tpu.memory_space<vmem>>, vector<16x256xbf16>
    tpu.vector_store %arg17[%c32, %c0_90], %141 {strides = array<i32>} : memref<144x256xbf16, #tpu.memory_space<vmem>>, vector<16x256xbf16>,
    %c1_i32_91 = arith.constant 1 : i32
    %143 = tpu.dynamic_rotate %121 by %c1_i32_91 dim 1 : vector<16x256xf32>, i32 -> vector<16x256xf32>
    %c3_92 = arith.constant 3 : index
    %c0_93 = arith.constant 0 : index
    %c0_94 = arith.constant 0 : index
    %144 = vector.load %arg2[%c3_92, %c0_93, %c0_94] : memref<9x1x256xf32, #tpu.memory_space<vmem>>, vector<1x1x256xf32>
    %145 = vector.shape_cast %144 : vector<1x1x256xf32> to vector<1x256xf32>
    %146 = vector.broadcast %145 : vector<1x256xf32> to vector<16x256xf32>
    %147 = arith.mulf %143, %146 : vector<16x256xf32>
    %148 = arith.truncf %147 : vector<16x256xf32> to vector<16x256xbf16>
    %c48 = arith.constant 48 : index
    %c0_95 = arith.constant 0 : index
    %149 = vector.load %arg17[%c48, %c0_95] : memref<144x256xbf16, #tpu.memory_space<vmem>>, vector<16x256xbf16>
    tpu.vector_store %arg17[%c48, %c0_95], %148 {strides = array<i32>} : memref<144x256xbf16, #tpu.memory_space<vmem>>, vector<16x256xbf16>,
    %150 = arith.truncf %121 : vector<16x256xf32> to vector<16x256xbf16>
    %c64_96 = arith.constant 64 : index
    %c0_97 = arith.constant 0 : index
    %151 = vector.load %arg17[%c64_96, %c0_97] : memref<144x256xbf16, #tpu.memory_space<vmem>>, vector<16x256xbf16>
    tpu.vector_store %arg17[%c64_96, %c0_97], %150 {strides = array<i32>} : memref<144x256xbf16, #tpu.memory_space<vmem>>, vector<16x256xbf16>,
    %c255_i32_98 = arith.constant 255 : i32
    %152 = tpu.dynamic_rotate %121 by %c255_i32_98 dim 1 : vector<16x256xf32>, i32 -> vector<16x256xf32>
    %c5_99 = arith.constant 5 : index
    %c0_100 = arith.constant 0 : index
    %c0_101 = arith.constant 0 : index
    %153 = vector.load %arg2[%c5_99, %c0_100, %c0_101] : memref<9x1x256xf32, #tpu.memory_space<vmem>>, vector<1x1x256xf32>
    %154 = vector.shape_cast %153 : vector<1x1x256xf32> to vector<1x256xf32>
    %155 = vector.broadcast %154 : vector<1x256xf32> to vector<16x256xf32>
    %156 = arith.mulf %152, %155 : vector<16x256xf32>
    %157 = arith.truncf %156 : vector<16x256xf32> to vector<16x256xbf16>
    %c80 = arith.constant 80 : index
    %c0_102 = arith.constant 0 : index
    %158 = vector.load %arg17[%c80, %c0_102] : memref<144x256xbf16, #tpu.memory_space<vmem>>, vector<16x256xbf16>
    tpu.vector_store %arg17[%c80, %c0_102], %157 {strides = array<i32>} : memref<144x256xbf16, #tpu.memory_space<vmem>>, vector<16x256xbf16>,
    %c241_i32_103 = arith.constant 241 : i32
    %159 = tpu.dynamic_rotate %121 by %c241_i32_103 dim 1 : vector<16x256xf32>, i32 -> vector<16x256xf32>
    %c6_104 = arith.constant 6 : index
    %c0_105 = arith.constant 0 : index
    %c0_106 = arith.constant 0 : index
    %160 = vector.load %arg2[%c6_104, %c0_105, %c0_106] : memref<9x1x256xf32, #tpu.memory_space<vmem>>, vector<1x1x256xf32>
    %161 = vector.shape_cast %160 : vector<1x1x256xf32> to vector<1x256xf32>
    %162 = vector.broadcast %161 : vector<1x256xf32> to vector<16x256xf32>
    %163 = arith.mulf %159, %162 : vector<16x256xf32>
    %164 = arith.truncf %163 : vector<16x256xf32> to vector<16x256xbf16>
    %c96 = arith.constant 96 : index
    %c0_107 = arith.constant 0 : index
    %165 = vector.load %arg17[%c96, %c0_107] : memref<144x256xbf16, #tpu.memory_space<vmem>>, vector<16x256xbf16>
    tpu.vector_store %arg17[%c96, %c0_107], %164 {strides = array<i32>} : memref<144x256xbf16, #tpu.memory_space<vmem>>, vector<16x256xbf16>,
    %c240_i32_108 = arith.constant 240 : i32
    %166 = tpu.dynamic_rotate %121 by %c240_i32_108 dim 1 : vector<16x256xf32>, i32 -> vector<16x256xf32>
    %c7_109 = arith.constant 7 : index
    %c0_110 = arith.constant 0 : index
    %c0_111 = arith.constant 0 : index
    %167 = vector.load %arg2[%c7_109, %c0_110, %c0_111] : memref<9x1x256xf32, #tpu.memory_space<vmem>>, vector<1x1x256xf32>
    %168 = vector.shape_cast %167 : vector<1x1x256xf32> to vector<1x256xf32>
    %169 = vector.broadcast %168 : vector<1x256xf32> to vector<16x256xf32>
    %170 = arith.mulf %166, %169 : vector<16x256xf32>
    %171 = arith.truncf %170 : vector<16x256xf32> to vector<16x256xbf16>
    %c112 = arith.constant 112 : index
    %c0_112 = arith.constant 0 : index
    %172 = vector.load %arg17[%c112, %c0_112] : memref<144x256xbf16, #tpu.memory_space<vmem>>, vector<16x256xbf16>
    tpu.vector_store %arg17[%c112, %c0_112], %171 {strides = array<i32>} : memref<144x256xbf16, #tpu.memory_space<vmem>>, vector<16x256xbf16>,
    %c239_i32_113 = arith.constant 239 : i32
    %173 = tpu.dynamic_rotate %121 by %c239_i32_113 dim 1 : vector<16x256xf32>, i32 -> vector<16x256xf32>
    %c8_114 = arith.constant 8 : index
    %c0_115 = arith.constant 0 : index
    %c0_116 = arith.constant 0 : index
    %174 = vector.load %arg2[%c8_114, %c0_115, %c0_116] : memref<9x1x256xf32, #tpu.memory_space<vmem>>, vector<1x1x256xf32>
    %175 = vector.shape_cast %174 : vector<1x1x256xf32> to vector<1x256xf32>
    %176 = vector.broadcast %175 : vector<1x256xf32> to vector<16x256xf32>
    %177 = arith.mulf %173, %176 : vector<16x256xf32>
    %178 = arith.truncf %177 : vector<16x256xf32> to vector<16x256xbf16>
    %c128_117 = arith.constant 128 : index
    %c0_118 = arith.constant 0 : index
    %179 = vector.load %arg17[%c128_117, %c0_118] : memref<144x256xbf16, #tpu.memory_space<vmem>>, vector<16x256xbf16>
    tpu.vector_store %arg17[%c128_117, %c0_118], %178 {strides = array<i32>} : memref<144x256xbf16, #tpu.memory_space<vmem>>, vector<16x256xbf16>,
    %c0_119 = arith.constant 0 : index
    %c0_120 = arith.constant 0 : index
    %180 = vector.load %arg13[%c0_119, %c0_120] : memref<8x144xbf16, #tpu.memory_space<vmem>>, vector<8x144xbf16>
    %c0_121 = arith.constant 0 : index
    %c0_122 = arith.constant 0 : index
    %181 = vector.load %arg17[%c0_121, %c0_122] : memref<144x256xbf16, #tpu.memory_space<vmem>>, vector<144x256xbf16>
    %cst_123 = arith.constant dense<0.000000e+00> : vector<8x256xf32>
    %182 = tpu.matmul %180, %181, %cst_123 {dimension_numbers = #tpu.dot_dimension_numbers<[1], [0], [0], [1], [0, 0, 1, 1], [], []>} : vector<8x144xbf16>, vector<144x256xbf16>, vector<8x256xf32> -> vector<8x256xf32>
    %c0_124 = arith.constant 0 : index
    %c0_125 = arith.constant 0 : index
    %183 = vector.load %arg14[%c0_124, %c0_125] : memref<8x256xf32, #tpu.memory_space<vmem>>, vector<8x256xf32>
    %184 = arith.addf %182, %183 : vector<8x256xf32>
    %c0_126 = arith.constant 0 : index
    %c0_127 = arith.constant 0 : index
    %c0_128 = arith.constant 0 : index
    %185 = vector.load %arg15[%c0_126, %c0_127, %c0_128] : memref<1x8x256xf32, #tpu.memory_space<vmem>>, vector<1x8x256xf32>
    %186 = vector.shape_cast %185 : vector<1x8x256xf32> to vector<8x256xf32>
    %187 = vector.shape_cast %184 : vector<8x256xf32> to vector<1x8x256xf32>
    tpu.vector_store %arg15[%c0_126, %c0_127, %c0_128], %187 {strides = array<i32>} : memref<1x8x256xf32, #tpu.memory_space<vmem>>, vector<1x8x256xf32>,
    return
  }
  func.func @transform_0(%arg0: i32) -> (i32, i32, i32) {
    %c0_i32 = arith.constant 0 : i32
    %c0_i32_0 = arith.constant 0 : i32
    %c0_i32_1 = arith.constant 0 : i32
    return %arg0, %c0_i32, %c0_i32_0 : i32, i32, i32
  }
  func.func @transform_1(%arg0: i32) -> (i32, i32, i32) {
    %c0_i32 = arith.constant 0 : i32
    %c0_i32_0 = arith.constant 0 : i32
    %c0_i32_1 = arith.constant 0 : i32
    %c0_i32_2 = arith.constant 0 : i32
    return %c0_i32, %c0_i32_0, %c0_i32_1 : i32, i32, i32
  }
  func.func @transform_2(%arg0: i32) -> (i32, i32) {
    %c0_i32 = arith.constant 0 : i32
    %c0_i32_0 = arith.constant 0 : i32
    %c0_i32_1 = arith.constant 0 : i32
    return %c0_i32, %c0_i32_0 : i32, i32
  }
  func.func @transform_3(%arg0: i32) -> (i32, i32) {
    %c0_i32 = arith.constant 0 : i32
    %c0_i32_0 = arith.constant 0 : i32
    %c0_i32_1 = arith.constant 0 : i32
    return %c0_i32, %c0_i32_0 : i32, i32
  }
  func.func @transform_4(%arg0: i32) -> (i32, i32) {
    %c0_i32 = arith.constant 0 : i32
    %c0_i32_0 = arith.constant 0 : i32
    %c0_i32_1 = arith.constant 0 : i32
    return %c0_i32, %c0_i32_0 : i32, i32
  }
  func.func @transform_5(%arg0: i32) -> (i32, i32) {
    %c0_i32 = arith.constant 0 : i32
    %c0_i32_0 = arith.constant 0 : i32
    %c0_i32_1 = arith.constant 0 : i32
    return %c0_i32, %c0_i32_0 : i32, i32
  }
  func.func @transform_6(%arg0: i32) -> (i32, i32) {
    %c0_i32 = arith.constant 0 : i32
    %c0_i32_0 = arith.constant 0 : i32
    %c0_i32_1 = arith.constant 0 : i32
    return %c0_i32, %c0_i32_0 : i32, i32
  }
  func.func @transform_7(%arg0: i32) -> (i32, i32) {
    %c0_i32 = arith.constant 0 : i32
    %c0_i32_0 = arith.constant 0 : i32
    %c0_i32_1 = arith.constant 0 : i32
    return %c0_i32, %c0_i32_0 : i32, i32
  }
  func.func @transform_8(%arg0: i32) -> (i32, i32, i32) {
    %c0_i32 = arith.constant 0 : i32
    %c0_i32_0 = arith.constant 0 : i32
    %c0_i32_1 = arith.constant 0 : i32
    return %arg0, %c0_i32, %c0_i32_0 : i32, i32, i32
  }
  func.func @transform_9(%arg0: i32) -> (i32, i32) {
    %c0_i32 = arith.constant 0 : i32
    %c0_i32_0 = arith.constant 0 : i32
    %c0_i32_1 = arith.constant 0 : i32
    return %c0_i32, %c0_i32_0 : i32, i32
  }
  func.func @transform_10(%arg0: i32) -> (i32, i32, i32) {
    %c0_i32 = arith.constant 0 : i32
    %c0_i32_0 = arith.constant 0 : i32
    %c0_i32_1 = arith.constant 0 : i32
    %c0_i32_2 = arith.constant 0 : i32
    return %c0_i32, %c0_i32_0, %c0_i32_1 : i32, i32, i32
  }
  func.func @transform_11(%arg0: i32) -> (i32, i32) {
    %c0_i32 = arith.constant 0 : i32
    %c0_i32_0 = arith.constant 0 : i32
    %c0_i32_1 = arith.constant 0 : i32
    return %c0_i32, %c0_i32_0 : i32, i32
  }
  func.func @transform_12(%arg0: i32) -> (i32, i32) {
    %c0_i32 = arith.constant 0 : i32
    %c0_i32_0 = arith.constant 0 : i32
    %c0_i32_1 = arith.constant 0 : i32
    return %c0_i32, %c0_i32_0 : i32, i32
  }
  func.func @transform_13(%arg0: i32) -> (i32, i32) {
    %c0_i32 = arith.constant 0 : i32
    %c0_i32_0 = arith.constant 0 : i32
    %c0_i32_1 = arith.constant 0 : i32
    return %c0_i32, %c0_i32_0 : i32, i32
  }
  func.func @transform_14(%arg0: i32) -> (i32, i32, i32) {
    %c0_i32 = arith.constant 0 : i32
    %c0_i32_0 = arith.constant 0 : i32
    %c0_i32_1 = arith.constant 0 : i32
    return %arg0, %c0_i32, %c0_i32_0 : i32, i32, i32
  }
}

</mosaic_0001>

<bundles_post_ra>
// kernel: tile.13
= control target key start
LH: loop header
LB: loop body
LE: loop exit
PB: predicated region body
PF: predicated region fallthrough
CT: control target
= control target key end

     0   :  { %s22_s0 = inlined_call_operand.vmem [shape: f32[8], index: 0, kind: input, shape index: {}]   ;;  %s23_s1 = inlined_call_operand.vmem [shape: f32[8,8], index: 1, kind: output, shape index: {}]  }
   0x1   :  { %v4_v0 = vld [vmem:[%s22_s0] ss:$0 sm:$0xff] }
   0x2   :  { %5 = vst [vmem:[%s23_s1] sm:$0xff] %v4_v0 }

// kernel: tile.18
= control target key start
LH: loop header
LB: loop body
LE: loop exit
PB: predicated region body
PF: predicated region fallthrough
CT: control target
= control target key end

     0   :  { %s22_s0 = inlined_call_operand.vmem [shape: f32[4], index: 0, kind: input, shape index: {}]   ;;  %s23_s1 = inlined_call_operand.vmem [shape: f32[4,4], index: 1, kind: output, shape index: {}]  }
   0x1   :  { %v4_v0 = vld [vmem:[%s22_s0] ss:$0 sm:$0xff] }
   0x2   :  { %5 = vst [vmem:[%s23_s1] sm:$0xf] %v4_v0 }

// kernel: tc_co_forward.1
= control target key start
LH: loop header
LB: loop body
LE: loop exit
PB: predicated region body
PF: predicated region fallthrough
CT: control target
= control target key end

     0   :  { %s2891_s29 = smov 0   ;;  %s4146_s0 = inlined_call_operand.vmem [shape: f32[2,64,256], index: 0, kind: input, shape index: {}]   ;;  %s4147_s1 = inlined_call_operand.vmem [shape: f32[9,1,256], index: 1, kind: input, shape index: {}]   ;;  %s4148_s2 = inlined_call_operand.vmem [shape: bf16[64,576], index: 2, kind: input, shape index: {}]   ;;  %s4149_s3 = inlined_call_operand.vmem [shape: f32[64,256], index: 3, kind: input, shape index: {}]   ;;  %s4150_s4 = inlined_call_operand.vmem [shape: bf16[16,64], index: 4, kind: input, shape index: {}]   ;;  %s4151_s5 = inlined_call_operand.vmem [shape: f32[16,256], index: 5, kind: input, shape index: {}]   ;;  %s4152_s6 = inlined_call_operand.vmem [shape: bf16[16,16], index: 6, kind: input, shape index: {}]   ;;  %s4153_s7 = inlined_call_operand.vmem [shape: f32[16,256], index: 7, kind: input, shape index: {}]   ;;  %s4154_s8 = inlined_call_operand.vmem [shape: bf16[2,8,256], index: 8, kind: input, shape index: {}]   ;;  %s4155_s9 = inlined_call_operand.vmem [shape: bf16[32,8], index: 9, kind: input, shape index: {}]   ;;  %s4156_s10 = inlined_call_operand.vmem [shape: f32[4,1,256], index: 10, kind: input, shape index: {}]   ;;  %s4157_s11 = inlined_call_operand.vmem [shape: f32[8,256], index: 11, kind: input, shape index: {}]   ;;  %s4158_s12 = inlined_call_operand.vmem [shape: bf16[8,144], index: 12, kind: input, shape index: {}]   ;;  %s4159_s13 = inlined_call_operand.vmem [shape: f32[8,256], index: 13, kind: input, shape index: {}]   ;;  %s4160_s14 = inlined_call_operand.vmem [shape: f32[2,8,256], index: 14, kind: output, shape index: {}]  }
   0x1 LB: > { %s2531_s30 = sadd.s32 4294967295, %s2805_s29   ;;  %p2535_p0 = scmp.ge.s32.totalorder %s2805_s29, 1  ;;  %s2805_s29 = sphi %s2891_s29, %s24_s29  }
   0x2   : > { %p422_p1 = scmp.lt.s32.totalorder %s2805_s29, 3 }
   0x4   : > { %p423_p2 = pnand %p2535_p0, %p422_p1 }
   0x5   : > { %p473_p3 = scmp.lt.s32.totalorder (!%p423_p2), %s2531_s30, 1  ;;  %s4167_s19 = smov (!%p423_p2), 127   ;;  %v537_v24 = vlaneseq (!%p423_p2)  ;;  %v2545_v29 = vld [vmem:[%s4147_s1 + $0xa] sm:$0x3] (!%p423_p2)  ;;  %vm1486_vm8 = vcmask (!%p423_p2), 523264   ;;  %vm1996_vm9 = vcmask (!%p423_p2), 1043456  }
   0x6   : > { %426 = sbr.rel (%p423_p2) target bundleno = 1530 (0x5fa), region = 76  ;;  %s2808_s20 = smov (!%p423_p2), 17   ;;  %vm1912_vm10 = vcmask (!%p423_p2), 130048   ;;  %vm1989_vm11 = vcmask (!%p423_p2), 64512  }
   0x7   : > { %s4165_s21 = smov (!%p423_p2), 113   ;;  %s2810_s22 = smov (!%p423_p2), 16   ;;  %v559_v25 = vshrl.u32 (!%p423_p2), %v537_v24, 7  ;;  %v3083_v26 = vand.u32 (!%p423_p2), 127, %v537_v24 }
   0x8   : > { %s4163_s23 = smov (!%p423_p2), 112   ;;  %s2812_s16 = smov (!%p423_p2), 15  }
   0x9   : > { %v3085_v27 = vsub.s32 (!%p423_p2), 0, %v559_v25  ;;  %v3091_v28 = vsub.s32 (!%p423_p2), 1, %v559_v25  ;;  %vm930_vm0 = vcmp.lt.s32.totalorder (!%p423_p2), %v3083_v26, 127  ;;  %vm539_vm1 = vcmp.lt.s32.totalorder (!%p423_p2), %v3083_v26, 17  ;;  %s2813_s17 = smov (!%p423_p2), 1   ;;  %s4161_s26 = smov (!%p423_p2), 111  }
   0xa   : > { %vm1024_vm2 = vcmp.lt.s32.totalorder (!%p423_p2), %v3083_v26, 113  ;;  %vm632_vm3 = vcmp.lt.s32.totalorder (!%p423_p2), %v3083_v26, 16  ;;  %vm1118_vm4 = vcmp.lt.s32.totalorder (!%p423_p2), %v3083_v26, 112  ;;  %vm726_vm5 = vcmp.lt.s32.totalorder (!%p423_p2), %v3083_v26, 15  ;;  %s4170_s24 = smov (!%p423_p2), 113   ;;  %s4172_s25 = smov (!%p423_p2), 111  }
   0xb   : > { %v3098_v32 = vrot.slane (!%p423_p2), %v2545_v29, %v3085_v27  ;;  %v3101_v33 = vrot.slane (!%p423_p2), %v2545_v29, %v3091_v28  ;;  %vm820_vm6 = vcmp.lt.s32.totalorder (!%p423_p2), %v3083_v26, 1  ;;  %vm1212_vm7 = vcmp.lt.s32.totalorder (!%p423_p2), %v3083_v26, 111  ;;  %v2410_v26 = vld [vmem:[%s4159_s13] sm:$0xff] (!%p423_p2) }
   0xd   : > { %s4174_s30 = smov (!%p473_p3, %s2531_s30), 1 }
   0xe   : > { %s2615_s15 = sshll.u32 %s4174_s30, 7 }
   0xf   : > { %s2905_s18 = scalar_lea.vmem %s4146_s0, %s2615_s15  ;;  %s4169_s15 = smov 127  }
  0x10   : > { %v2908_v0 = vld [vmem:[%s2905_s18 + $0x8] sm:$0xff]  ;;  %v2911_v1 = vld [vmem:[%s2905_s18] sm:$0xff]  ;;  %v2914_v2 = vld [vmem:[%s2905_s18 + $0x18] sm:$0xff] }
  0x11   : > { %914 = vrot.lane.b32.xlu1 %v2908_v0, %s4167_s19  ;;  %898 = vrot.lane.b32.xlu0 %v2911_v1, %s4167_s19  ;;  %v2921_v3 = vld [vmem:[%s2905_s18 + $0x10] sm:$0xff]  ;;  %v883_v4 = vpack.c.bf16 %v2914_v2, %v2908_v0  ;;  %v2926_v5 = vld [vmem:[%s2905_s18 + $0x38] sm:$0xff] }
  0x12   : > { %v2929_v6 = vld [vmem:[%s2905_s18 + $0x28] sm:$0xff]  ;;  %v882_v7 = vpack.c.bf16 %v2921_v3, %v2911_v1  ;;  %v2934_v8 = vld [vmem:[%s2905_s18 + $0x30] sm:$0xff]  ;;  %v2937_v9 = vld [vmem:[%s2905_s18 + $0x20] sm:$0xff] }
  0x13   : > { %1572 = vmatprep.subr.bf16.mxu0 %v883_v4  ;;  %v885_v10 = vpack.c.bf16 %v2926_v5, %v2929_v6  ;;  %v884_v11 = vpack.c.bf16 %v2934_v8, %v2937_v9  ;;  %v2948_v12 = vld [vmem:[%s2905_s18 + $0x50] sm:$0xff]  ;;  %v2951_v13 = vld [vmem:[%s2905_s18 + $0x40] sm:$0xff]  ;;  %v2954_v14 = vld [vmem:[%s2905_s18 + $0x58] sm:$0xff] }
  0x14   : > { %1573 = vmatpush1.bf16.msra.mxu0 %v882_v7  ;;  %v2957_v15 = vld [vmem:[%s2905_s18 + $0x48] sm:$0xff]  ;;  %v2962_v17 = vld [vmem:[%s2905_s18 + $0x78] sm:$0xff]  ;;  %v886_v19 = vpack.c.bf16 %v2948_v12, %v2951_v13  ;;  %v2974_v20 = vld [vmem:[%s2905_s18 + $0x70] sm:$0xff] }
  0x15   : > { %916 = vrot.lane.b32.xlu1 %v2914_v2, %s4167_s19  ;;  %900 = vrot.lane.b32.xlu0 %v2921_v3, %s4167_s19  ;;  %v887_v16 = vpack.c.bf16 %v2954_v14, %v2957_v15  ;;  %v2965_v18 = vld [vmem:[%s2905_s18 + $0x68] sm:$0xff]  ;;  %v2977_v21 = vld [vmem:[%s2905_s18 + $0x60] sm:$0xff] }
  0x16   : > { %1574 = vmatprep.subr.bf16.mxu0 %v885_v10  ;;  %v889_v22 = vpack.c.bf16 %v2962_v17, %v2965_v18  ;;  %v888_v23 = vpack.c.bf16 %v2974_v20, %v2977_v21 }
  0x18   : > { %1575 = vmatpush1.bf16.msra.mxu0 %v884_v11 }
  0x19   : > { %904 = vrot.lane.b32.xlu1 %v2934_v8, %s4167_s19  ;;  %902 = vrot.lane.b32.xlu0 %v2937_v9, %s4167_s19 }
  0x1a   : > { %1576 = vmatprep.subr.bf16.mxu0 %v887_v16 }
  0x1c   : > { %1577 = vmatpush1.bf16.msra.mxu0 %v886_v19 }
  0x1d   : > { %920 = vrot.lane.b32.xlu1 %v2926_v5, %s4167_s19  ;;  %918 = vrot.lane.b32.xlu0 %v2929_v6, %s4167_s19 }
  0x1e   : > { %1578 = vmatprep.subr.bf16.mxu0 %v889_v22 }
  0x20   : > { %1579 = vmatpush1.bf16.msra.mxu0 %v888_v23 }
  0x21   : > { %908 = vrot.lane.b32.xlu1 %v2948_v12, %s4167_s19  ;;  %906 = vrot.lane.b32.xlu0 %v2951_v13, %s4167_s19 }
  0x25   : > { %924 = vrot.lane.b32.xlu1 %v2954_v14, %s4167_s19  ;;  %922 = vrot.lane.b32.xlu0 %v2957_v15, %s4167_s19 }
  0x29   : > { %912 = vrot.lane.b32.xlu1 %v2974_v20, %s4167_s19  ;;  %910 = vrot.lane.b32.xlu0 %v2977_v21, %s4167_s19 }
  0x2d   : > { %928 = vrot.lane.b32.xlu1 %v2962_v17, %s4167_s19  ;;  %926 = vrot.lane.b32.xlu0 %v2965_v18, %s4167_s19 }
  0x31   : > { %507 = vrot.lane.b32.xlu1 %v2921_v3, %s2808_s20  ;;  %505 = vrot.lane.b32.xlu0 %v2911_v1, %s2808_s20 }
  0x35   : > { %523 = vrot.lane.b32.xlu1 %v2914_v2, %s2808_s20  ;;  %521 = vrot.lane.b32.xlu0 %v2908_v0, %s2808_s20 }
  0x39   : > { %994 = vrot.lane.b32.xlu1 %v2921_v3, %s4165_s21  ;;  %992 = vrot.lane.b32.xlu0 %v2911_v1, %s4165_s21 }
  0x3d   : > { %1010 = vrot.lane.b32.xlu1 %v2914_v2, %s4165_s21  ;;  %1008 = vrot.lane.b32.xlu0 %v2908_v0, %s4165_s21 }
  0x41   : > { %511 = vrot.lane.b32.xlu1 %v2934_v8, %s2808_s20  ;;  %509 = vrot.lane.b32.xlu0 %v2937_v9, %s2808_s20 }
  0x45   : > { %527 = vrot.lane.b32.xlu1 %v2926_v5, %s2808_s20  ;;  %525 = vrot.lane.b32.xlu0 %v2929_v6, %s2808_s20 }
  0x49   : > { %998 = vrot.lane.b32.xlu1 %v2934_v8, %s4165_s21  ;;  %996 = vrot.lane.b32.xlu0 %v2937_v9, %s4165_s21 }
  0x4d   : > { %1014 = vrot.lane.b32.xlu1 %v2926_v5, %s4165_s21  ;;  %1012 = vrot.lane.b32.xlu0 %v2929_v6, %s4165_s21 }
  0x51   : > { %515 = vrot.lane.b32.xlu1 %v2948_v12, %s2808_s20  ;;  %513 = vrot.lane.b32.xlu0 %v2951_v13, %s2808_s20 }
  0x55   : > { %531 = vrot.lane.b32.xlu1 %v2954_v14, %s2808_s20  ;;  %529 = vrot.lane.b32.xlu0 %v2957_v15, %s2808_s20 }
  0x59   : > { %1002 = vrot.lane.b32.xlu1 %v2948_v12, %s4165_s21  ;;  %1000 = vrot.lane.b32.xlu0 %v2951_v13, %s4165_s21 }
  0x5d   : > { %1018 = vrot.lane.b32.xlu1 %v2954_v14, %s4165_s21  ;;  %1016 = vrot.lane.b32.xlu0 %v2957_v15, %s4165_s21 }
  0x61   : > { %519 = vrot.lane.b32.xlu1 %v2974_v20, %s2808_s20  ;;  %517 = vrot.lane.b32.xlu0 %v2977_v21, %s2808_s20 }
  0x65   : > { %535 = vrot.lane.b32.xlu1 %v2962_v17, %s2808_s20  ;;  %533 = vrot.lane.b32.xlu0 %v2965_v18, %s2808_s20 }
  0x69   : > { %1006 = vrot.lane.b32.xlu1 %v2974_v20, %s4165_s21  ;;  %1004 = vrot.lane.b32.xlu0 %v2977_v21, %s4165_s21 }
  0x6d   : > { %1022 = vrot.lane.b32.xlu1 %v2962_v17, %s4165_s21  ;;  %1020 = vrot.lane.b32.xlu0 %v2965_v18, %s4165_s21  ;;  %s2617_s21 = sshll.u32 %s4174_s30, 4 }
  0x71   : > { %602 = vrot.lane.b32.xlu1 %v2921_v3, %s2810_s22  ;;  %600 = vrot.lane.b32.xlu0 %v2911_v1, %s2810_s22 }
  0x75   : > { %618 = vrot.lane.b32.xlu1 %v2914_v2, %s2810_s22  ;;  %616 = vrot.lane.b32.xlu0 %v2908_v0, %s2810_s22 }
  0x79   : > { %1088 = vrot.lane.b32.xlu1 %v2921_v3, %s4163_s23  ;;  %1086 = vrot.lane.b32.xlu0 %v2911_v1, %s4163_s23 }
  0x7d   : > { %1104 = vrot.lane.b32.xlu1 %v2914_v2, %s4163_s23  ;;  %1102 = vrot.lane.b32.xlu0 %v2908_v0, %s4163_s23 }
  0x81   : > { %606 = vrot.lane.b32.xlu1 %v2934_v8, %s2810_s22  ;;  %604 = vrot.lane.b32.xlu0 %v2937_v9, %s2810_s22 }
  0x83   : > { %v915_v30 = vpop.permute.xlu1 %914  ;;  %v899_v31 = vpop.permute.xlu0 %898 }
  0x84   : > { %v931_v34 = vsel %vm930_vm0, %v899_v31, %v915_v30  ;;  %v939_v35 = vsel %vm930_vm0, %v915_v30, %v899_v31 }
  0x85   : > { %622 = vrot.lane.b32.xlu1 %v2926_v5, %s2810_s22  ;;  %620 = vrot.lane.b32.xlu0 %v2929_v6, %s2810_s22  ;;  %v960_v38 = vmul.f32 %v3098_v32, %v931_v34  ;;  %v961_v41 = vmul.f32 %v3101_v33, %v939_v35 }
  0x87   : > { %v917_v36 = vpop.permute.xlu1 %916  ;;  %v901_v37 = vpop.permute.xlu0 %900 }
  0x88   : > { %v932_v39 = vsel %vm930_vm0, %v901_v37, %v917_v36  ;;  %v940_v40 = vsel %vm930_vm0, %v917_v36, %v901_v37 }
  0x89   : > { %v962_v42 = vmul.f32 %v3098_v32, %v932_v39  ;;  %v963_v43 = vmul.f32 %v3101_v33, %v940_v40  ;;  %1092 = vrot.lane.b32.xlu1 %v2934_v8, %s4163_s23  ;;  %1090 = vrot.lane.b32.xlu0 %v2937_v9, %s4163_s23 }
  0x8b   : > { %v905_v44 = vpop.permute.xlu1 %904  ;;  %v903_v45 = vpop.permute.xlu0 %902  ;;  %v977_v46 = vpack.c.bf16 %v963_v43, %v961_v41  ;;  %v976_v47 = vpack.c.bf16 %v962_v42, %v960_v38  ;;  %v556_v43 = vld [vmem:[%s4147_s1] sm:$0x3] }
  0x8d   : > { %1108 = vrot.lane.b32.xlu1 %v2926_v5, %s4163_s23  ;;  %1106 = vrot.lane.b32.xlu0 %v2929_v6, %s4163_s23 }
  0x8e   : > { %1580 = vmatprep.subr.bf16.mxu0 %v977_v46 }
  0x8f   : > { %1581 = vmatpush1.bf16.msra.mxu0 %v976_v47  ;;  %v921_v48 = vpop.permute.xlu1 %920  ;;  %v919_v49 = vpop.permute.xlu0 %918 }
  0x90   : > { %v934_v50 = vsel %vm930_vm0, %v905_v44, %v921_v48  ;;  %v942_v51 = vsel %vm930_vm0, %v921_v48, %v905_v44  ;;  %v933_v52 = vsel %vm930_vm0, %v903_v45, %v919_v49  ;;  %v941_v53 = vsel %vm930_vm0, %v919_v49, %v903_v45 }
  0x91   : > { %v966_v54 = vmul.f32 %v3098_v32, %v934_v50  ;;  %v967_v55 = vmul.f32 %v3101_v33, %v942_v51  ;;  %v964_v56 = vmul.f32 %v3098_v32, %v933_v52  ;;  %v965_v57 = vmul.f32 %v3101_v33, %v941_v53  ;;  %610 = vrot.lane.b32.xlu1 %v2948_v12, %s2810_s22 }
  0x92   : > { %608 = vrot.lane.b32.xlu0 %v2951_v13, %s2810_s22 }
  0x93   : > { %v909_v58 = vpop.permute.xlu1 %908  ;;  %v907_v59 = vpop.permute.xlu0 %906  ;;  %v979_v60 = vpack.c.bf16 %v967_v55, %v965_v57  ;;  %v978_v61 = vpack.c.bf16 %v966_v54, %v964_v56 }
  0x95   : > { %626 = vrot.lane.b32.xlu1 %v2954_v14, %s2810_s22  ;;  %1582 = vmatprep.subr.bf16.mxu0 %v979_v60 }
  0x96   : > { %624 = vrot.lane.b32.xlu0 %v2957_v15, %s2810_s22  ;;  %1583 = vmatpush1.bf16.msra.mxu0 %v978_v61 }
  0x97   : > { %v925_v62 = vpop.permute.xlu1 %924  ;;  %v923_v63 = vpop.permute.xlu0 %922 }
  0x98   : > { %v936_v4 = vsel %vm930_vm0, %v909_v58, %v925_v62  ;;  %v944_v7 = vsel %vm930_vm0, %v925_v62, %v909_v58  ;;  %v935_v10 = vsel %vm930_vm0, %v907_v59, %v923_v63  ;;  %v943_v11 = vsel %vm930_vm0, %v923_v63, %v907_v59  ;;  %v2546_v58 = vld [vmem:[%s4147_s1 + $0xc] sm:$0x3] }
  0x99   : > { %v970_v16 = vmul.f32 %v3098_v32, %v936_v4  ;;  %v971_v19 = vmul.f32 %v3101_v33, %v944_v7  ;;  %v968_v22 = vmul.f32 %v3098_v32, %v935_v10  ;;  %v969_v23 = vmul.f32 %v3101_v33, %v943_v11  ;;  %1096 = vrot.lane.b32.xlu1 %v2948_v12, %s4163_s23 }
  0x9a   : > { %1094 = vrot.lane.b32.xlu0 %v2951_v13, %s4163_s23  ;;  %v3220_v63 = vrot.slane %v2546_v58, %v3085_v27  ;;  %v3223_v4 = vrot.slane %v2546_v58, %v3091_v28 }
  0x9b   : > { %v913_v24 = vpop.permute.xlu1 %912  ;;  %v911_v25 = vpop.permute.xlu0 %910  ;;  %v981_v29 = vpack.c.bf16 %v971_v19, %v969_v23  ;;  %v980_v30 = vpack.c.bf16 %v970_v16, %v968_v22 }
  0x9d   : > { %1112 = vrot.lane.b32.xlu1 %v2954_v14, %s4163_s23  ;;  %1584 = vmatprep.subr.bf16.mxu0 %v981_v29 }
  0x9e   : > { %1110 = vrot.lane.b32.xlu0 %v2957_v15, %s4163_s23  ;;  %1585 = vmatpush1.bf16.msra.mxu0 %v980_v30 }
  0x9f   : > { %v929_v31 = vpop.permute.xlu1 %928  ;;  %v927_v34 = vpop.permute.xlu0 %926 }
  0xa0   : > { %v938_v35 = vsel %vm930_vm0, %v913_v24, %v929_v31  ;;  %v946_v36 = vsel %vm930_vm0, %v929_v31, %v913_v24  ;;  %v937_v37 = vsel %vm930_vm0, %v911_v25, %v927_v34  ;;  %v945_v38 = vsel %vm930_vm0, %v927_v34, %v911_v25 }
  0xa1   : > { %v974_v39 = vmul.f32 %v3098_v32, %v938_v35  ;;  %v975_v40 = vmul.f32 %v3101_v33, %v946_v36  ;;  %v972_v41 = vmul.f32 %v3098_v32, %v937_v37  ;;  %v973_v42 = vmul.f32 %v3101_v33, %v945_v38  ;;  %614 = vrot.lane.b32.xlu1 %v2974_v20, %s2810_s22 }
  0xa2   : > { %612 = vrot.lane.b32.xlu0 %v2977_v21, %s2810_s22  ;;  %v3190_v32 = vrot.slane %v556_v43, %v3091_v28  ;;  %v3193_v33 = vrot.slane %v556_v43, %v3085_v27 }
  0xa3   : > { %v508_v44 = vpop.permute.xlu1 %507  ;;  %v506_v45 = vpop.permute.xlu0 %505  ;;  %v983_v46 = vpack.c.bf16 %v975_v40, %v973_v42  ;;  %v982_v47 = vpack.c.bf16 %v974_v39, %v972_v41 }
  0xa5   : > { %630 = vrot.lane.b32.xlu1 %v2962_v17, %s2810_s22  ;;  %1586 = vmatprep.subr.bf16.mxu0 %v983_v46 }
  0xa6   : > { %628 = vrot.lane.b32.xlu0 %v2965_v18, %s2810_s22  ;;  %1587 = vmatpush1.bf16.msra.mxu0 %v982_v47 }
  0xa7   : > { %v524_v48 = vpop.permute.xlu1 %523  ;;  %v522_v49 = vpop.permute.xlu0 %521 }
  0xa8   : > { %v549_v50 = vsel %vm539_vm1, %v524_v48, %v508_v44  ;;  %v548_v51 = vsel %vm539_vm1, %v522_v49, %v506_v45  ;;  %v540_v52 = vsel %vm539_vm1, %v506_v45, %v522_v49  ;;  %v541_v53 = vsel %vm539_vm1, %v508_v44, %v524_v48 }
  0xa9   : > { %1100 = vrot.lane.b32.xlu1 %v2974_v20, %s4163_s23  ;;  %v569_v54 = vmul.f32 %v3190_v32, %v540_v52  ;;  %v571_v55 = vmul.f32 %v3190_v32, %v541_v53  ;;  %v568_v56 = vmul.f32 %v3193_v33, %v548_v51  ;;  %v570_v57 = vmul.f32 %v3193_v33, %v549_v50 }
  0xaa   : > { %1098 = vrot.lane.b32.xlu0 %v2977_v21, %s4163_s23 }
  0xab   : > { %v995_v59 = vpop.permute.xlu1 %994  ;;  %v993_v60 = vpop.permute.xlu0 %992  ;;  %v585_v61 = vpack.c.bf16 %v571_v55, %v569_v54  ;;  %v584_v62 = vpack.c.bf16 %v570_v57, %v568_v56 }
  0xad   : > { %1116 = vrot.lane.b32.xlu1 %v2962_v17, %s4163_s23  ;;  %1499 = vmatprep.subr.bf16.mxu1 %v585_v61 }
  0xae   : > { %1114 = vrot.lane.b32.xlu0 %v2965_v18, %s4163_s23  ;;  %1500 = vmatpush1.bf16.msra.mxu1 %v584_v62 }
  0xaf   : > { %v1011_v7 = vpop.permute.xlu1 %1010  ;;  %v1009_v10 = vpop.permute.xlu0 %1008 }
  0xb0   : > { %v1026_v11 = vsel %vm1024_vm2, %v995_v59, %v1011_v7  ;;  %v1034_v16 = vsel %vm1024_vm2, %v1011_v7, %v995_v59  ;;  %v1025_v19 = vsel %vm1024_vm2, %v993_v60, %v1009_v10  ;;  %v1033_v22 = vsel %vm1024_vm2, %v1009_v10, %v993_v60 }
  0xb1   : > { %v1056_v23 = vmul.f32 %v3220_v63, %v1026_v11  ;;  %v1057_v24 = vmul.f32 %v3223_v4, %v1034_v16  ;;  %v1054_v25 = vmul.f32 %v3220_v63, %v1025_v19  ;;  %v1055_v29 = vmul.f32 %v3223_v4, %v1033_v22  ;;  %696 = vrot.lane.b32.xlu1 %v2921_v3, %s2812_s16 }
  0xb2   : > { %694 = vrot.lane.b32.xlu0 %v2911_v1, %s2812_s16 }
  0xb3   : > { %v512_v30 = vpop.permute.xlu1 %511  ;;  %v510_v31 = vpop.permute.xlu0 %509  ;;  %v1071_v34 = vpack.c.bf16 %v1057_v24, %v1055_v29  ;;  %v1070_v35 = vpack.c.bf16 %v1056_v23, %v1054_v25 }
  0xb5   : > { %712 = vrot.lane.b32.xlu1 %v2914_v2, %s2812_s16  ;;  %1588 = vmatprep.subr.bf16.mxu0 %v1071_v34 }
  0xb6   : > { %710 = vrot.lane.b32.xlu0 %v2908_v0, %s2812_s16  ;;  %1589 = vmatpush1.bf16.msra.mxu0 %v1070_v35 }
  0xb7   : > { %v528_v36 = vpop.permute.xlu1 %527  ;;  %v526_v37 = vpop.permute.xlu0 %525 }
  0xb8   : > { %v543_v38 = vsel %vm539_vm1, %v512_v30, %v528_v36  ;;  %v551_v39 = vsel %vm539_vm1, %v528_v36, %v512_v30  ;;  %v542_v40 = vsel %vm539_vm1, %v510_v31, %v526_v37  ;;  %v550_v41 = vsel %vm539_vm1, %v526_v37, %v510_v31 }
  0xb9   : > { %v574_v42 = vmul.f32 %v3193_v33, %v551_v39  ;;  %v575_v43 = vmul.f32 %v3190_v32, %v543_v38  ;;  %v572_v44 = vmul.f32 %v3193_v33, %v550_v41  ;;  %v573_v45 = vmul.f32 %v3190_v32, %v542_v40  ;;  %700 = vrot.lane.b32.xlu1 %v2934_v8, %s2812_s16 }
  0xba   : > { %698 = vrot.lane.b32.xlu0 %v2937_v9, %s2812_s16 }
  0xbb   : > { %v999_v46 = vpop.permute.xlu1 %998  ;;  %v997_v47 = vpop.permute.xlu0 %996  ;;  %v587_v48 = vpack.c.bf16 %v575_v43, %v573_v45  ;;  %v586_v49 = vpack.c.bf16 %v574_v42, %v572_v44 }
  0xbd   : > { %716 = vrot.lane.b32.xlu1 %v2926_v5, %s2812_s16  ;;  %1501 = vmatprep.subr.bf16.mxu1 %v587_v48 }
  0xbe   : > { %714 = vrot.lane.b32.xlu0 %v2929_v6, %s2812_s16  ;;  %1502 = vmatpush1.bf16.msra.mxu1 %v586_v49 }
  0xbf   : > { %v1015_v50 = vpop.permute.xlu1 %1014  ;;  %v1013_v51 = vpop.permute.xlu0 %1012 }
  0xc0   : > { %v1028_v52 = vsel %vm1024_vm2, %v999_v46, %v1015_v50  ;;  %v1036_v53 = vsel %vm1024_vm2, %v1015_v50, %v999_v46  ;;  %v1027_v54 = vsel %vm1024_vm2, %v997_v47, %v1013_v51  ;;  %v1035_v55 = vsel %vm1024_vm2, %v1013_v51, %v997_v47  ;;  %v2685_v51 = vld [vmem:[%s4148_s2 + $0xc] ss:$20 sps:$4 sm:$0xff]  }
  0xc1   : > { %v1060_v56 = vmul.f32 %v3220_v63, %v1028_v52  ;;  %v1061_v57 = vmul.f32 %v3223_v4, %v1036_v53  ;;  %v1058_v58 = vmul.f32 %v3220_v63, %v1027_v54  ;;  %v1059_v59 = vmul.f32 %v3223_v4, %v1035_v55  ;;  %704 = vrot.lane.b32.xlu1 %v2948_v12, %s2812_s16 }
  0xc2   : > { %702 = vrot.lane.b32.xlu0 %v2951_v13, %s2812_s16  ;;  %1604 = vmatprep.mubr.bf16.mxu0 %v2685_v51 }
  0xc3   : > { %v516_v60 = vpop.permute.xlu1 %515  ;;  %v514_v61 = vpop.permute.xlu0 %513  ;;  %v1073_v62 = vpack.c.bf16 %v1061_v57, %v1059_v59  ;;  %v1072_v7 = vpack.c.bf16 %v1060_v56, %v1058_v58 }
  0xc5   : > { %720 = vrot.lane.b32.xlu1 %v2954_v14, %s2812_s16  ;;  %1590 = vmatprep.subr.bf16.mxu0 %v1073_v62 }
  0xc6   : > { %718 = vrot.lane.b32.xlu0 %v2957_v15, %s2812_s16  ;;  %1591 = vmatpush1.bf16.msra.mxu0 %v1072_v7 }
  0xc7   : > { %v532_v10 = vpop.permute.xlu1 %531  ;;  %v530_v11 = vpop.permute.xlu0 %529 }
  0xc8   : > { %v545_v16 = vsel %vm539_vm1, %v516_v60, %v532_v10  ;;  %v553_v19 = vsel %vm539_vm1, %v532_v10, %v516_v60  ;;  %v544_v22 = vsel %vm539_vm1, %v514_v61, %v530_v11  ;;  %v552_v23 = vsel %vm539_vm1, %v530_v11, %v514_v61 }
  0xc9   : > { %v578_v24 = vmul.f32 %v3193_v33, %v553_v19  ;;  %v579_v25 = vmul.f32 %v3190_v32, %v545_v16  ;;  %v576_v29 = vmul.f32 %v3193_v33, %v552_v23  ;;  %v577_v30 = vmul.f32 %v3190_v32, %v544_v22  ;;  %708 = vrot.lane.b32.xlu1 %v2974_v20, %s2812_s16 }
  0xca   : > { %706 = vrot.lane.b32.xlu0 %v2977_v21, %s2812_s16 }
  0xcb   : > { %v1003_v31 = vpop.permute.xlu1 %1002  ;;  %v1001_v34 = vpop.permute.xlu0 %1000  ;;  %v589_v35 = vpack.c.bf16 %v579_v25, %v577_v30  ;;  %v588_v36 = vpack.c.bf16 %v578_v24, %v576_v29  ;;  %v2542_v24 = vld [vmem:[%s4147_s1 + $0x2] sm:$0x3] }
  0xcd   : > { %724 = vrot.lane.b32.xlu1 %v2962_v17, %s2812_s16  ;;  %1503 = vmatprep.subr.bf16.mxu1 %v589_v35 }
  0xce   : > { %722 = vrot.lane.b32.xlu0 %v2965_v18, %s2812_s16  ;;  %1504 = vmatpush1.bf16.msra.mxu1 %v588_v36 }
  0xcf   : > { %v1019_v37 = vpop.permute.xlu1 %1018  ;;  %v1017_v38 = vpop.permute.xlu0 %1016 }
  0xd0   : > { %v1030_v39 = vsel %vm1024_vm2, %v1003_v31, %v1019_v37  ;;  %v1038_v40 = vsel %vm1024_vm2, %v1019_v37, %v1003_v31  ;;  %v1029_v41 = vsel %vm1024_vm2, %v1001_v34, %v1017_v38  ;;  %v1037_v42 = vsel %vm1024_vm2, %v1017_v38, %v1001_v34 }
  0xd1   : > { %v1064_v43 = vmul.f32 %v3220_v63, %v1030_v39  ;;  %v1065_v44 = vmul.f32 %v3223_v4, %v1038_v40  ;;  %v1062_v45 = vmul.f32 %v3220_v63, %v1029_v41  ;;  %v1063_v46 = vmul.f32 %v3223_v4, %v1037_v42  ;;  %790 = vrot.lane.b32.xlu1 %v2921_v3, %s2813_s17 }
  0xd2   : > { %788 = vrot.lane.b32.xlu0 %v2911_v1, %s2813_s17 }
  0xd3   : > { %v520_v47 = vpop.permute.xlu1 %519  ;;  %v518_v48 = vpop.permute.xlu0 %517  ;;  %v1075_v49 = vpack.c.bf16 %v1065_v44, %v1063_v46  ;;  %v1074_v50 = vpack.c.bf16 %v1064_v43, %v1062_v45  ;;  %v2547_v44 = vld [vmem:[%s4147_s1 + $0xe] sm:$0x3] }
  0xd5   : > { %806 = vrot.lane.b32.xlu1 %v2914_v2, %s2813_s17  ;;  %1592 = vmatprep.subr.bf16.mxu0 %v1075_v49  ;;  %v3403_v49 = vrot.slane %v2547_v44, %v3085_v27 }
  0xd6   : > { %804 = vrot.lane.b32.xlu0 %v2908_v0, %s2813_s17  ;;  %1593 = vmatpush1.bf16.msra.mxu0 %v1074_v50 }
  0xd7   : > { %v536_v52 = vpop.permute.xlu1 %535  ;;  %v534_v53 = vpop.permute.xlu0 %533 }
  0xd8   : > { %v547_v54 = vsel %vm539_vm1, %v520_v47, %v536_v52  ;;  %v555_v55 = vsel %vm539_vm1, %v536_v52, %v520_v47  ;;  %v546_v56 = vsel %vm539_vm1, %v518_v48, %v534_v53  ;;  %v554_v57 = vsel %vm539_vm1, %v534_v53, %v518_v48 }
  0xd9   : > { %v582_v58 = vmul.f32 %v3193_v33, %v555_v55  ;;  %v583_v59 = vmul.f32 %v3190_v32, %v547_v54  ;;  %v580_v60 = vmul.f32 %v3193_v33, %v554_v57  ;;  %v581_v61 = vmul.f32 %v3190_v32, %v546_v56  ;;  %1182 = vrot.lane.b32.xlu1 %v2921_v3, %s4161_s26 }
  0xda   : > { %1180 = vrot.lane.b32.xlu0 %v2911_v1, %s4161_s26 }
  0xdb   : > { %v1007_v62 = vpop.permute.xlu1 %1006  ;;  %v1005_v7 = vpop.permute.xlu0 %1004  ;;  %v591_v10 = vpack.c.bf16 %v583_v59, %v581_v61  ;;  %v590_v11 = vpack.c.bf16 %v582_v58, %v580_v60 }
  0xdd   : > { %1198 = vrot.lane.b32.xlu1 %v2914_v2, %s4161_s26  ;;  %1505 = vmatprep.subr.bf16.mxu1 %v591_v10 }
  0xde   : > { %1196 = vrot.lane.b32.xlu0 %v2908_v0, %s4161_s26  ;;  %1506 = vmatpush1.bf16.msra.mxu1 %v590_v11 }
  0xdf   : > { %v1023_v32 = vpop.permute.xlu1 %1022  ;;  %v1021_v33 = vpop.permute.xlu0 %1020 }
  0xe0   : > { %v1032_v3 = vsel %vm1024_vm2, %v1007_v62, %v1023_v32  ;;  %v1040_v1 = vsel %vm1024_vm2, %v1023_v32, %v1007_v62  ;;  %v1031_v16 = vsel %vm1024_vm2, %v1005_v7, %v1021_v33  ;;  %v1039_v19 = vsel %vm1024_vm2, %v1021_v33, %v1005_v7 }
  0xe1   : > { %v1068_v2 = vmul.f32 %v3220_v63, %v1032_v3  ;;  %v1069_v22 = vmul.f32 %v3223_v4, %v1040_v1  ;;  %v1066_v0 = vmul.f32 %v3220_v63, %v1031_v16  ;;  %v1067_v23 = vmul.f32 %v3223_v4, %v1039_v19  ;;  %794 = vrot.lane.b32.xlu1 %v2934_v8, %s2813_s17 }
  0xe2   : > { %792 = vrot.lane.b32.xlu0 %v2937_v9, %s2813_s17  ;;  %v3373_v63 = vrot.slane %v2542_v24, %v3085_v27  ;;  %v3376_v4 = vrot.slane %v2542_v24, %v3091_v28 }
  0xe3   : > { %v603_v25 = vpop.permute.xlu1 %602  ;;  %v601_v29 = vpop.permute.xlu0 %600  ;;  %v1077_v30 = vpack.c.bf16 %v1069_v22, %v1067_v23  ;;  %v1076_v31 = vpack.c.bf16 %v1068_v2, %v1066_v0 }
  0xe5   : > { %810 = vrot.lane.b32.xlu1 %v2926_v5, %s2813_s17  ;;  %1594 = vmatprep.subr.bf16.mxu0 %v1077_v30 }
  0xe6   : > { %808 = vrot.lane.b32.xlu0 %v2929_v6, %s2813_s17  ;;  %1595 = vmatpush1.bf16.msra.mxu0 %v1076_v31 }
  0xe7   : > { %v619_v34 = vpop.permute.xlu1 %618  ;;  %v617_v35 = vpop.permute.xlu0 %616 }
  0xe8   : > { %v634_v36 = vsel %vm632_vm3, %v603_v25, %v619_v34  ;;  %v642_v37 = vsel %vm632_vm3, %v619_v34, %v603_v25  ;;  %v633_v38 = vsel %vm632_vm3, %v601_v29, %v617_v35  ;;  %v641_v39 = vsel %vm632_vm3, %v617_v35, %v601_v29  ;;  %v2697_v34 = vld [vmem:[%s4148_s2 + $0x4] ss:$20 sps:$4 sm:$0xff]  }
  0xe9   : > { %v664_v40 = vmul.f32 %v3373_v63, %v642_v37  ;;  %v665_v41 = vmul.f32 %v3376_v4, %v634_v36  ;;  %v662_v42 = vmul.f32 %v3373_v63, %v641_v39  ;;  %v663_v43 = vmul.f32 %v3376_v4, %v633_v38  ;;  %1186 = vrot.lane.b32.xlu1 %v2934_v8, %s4161_s26 }
  0xea   : > { %1184 = vrot.lane.b32.xlu0 %v2937_v9, %s4161_s26  ;;  %v3406_v8 = vrot.slane %v2547_v44, %v3091_v28  ;;  %1531 = vmatprep.mubr.bf16.mxu1 %v2697_v34 }
  0xeb   : > { %v1089_v45 = vpop.permute.xlu1 %1088  ;;  %v1087_v46 = vpop.permute.xlu0 %1086  ;;  %v679_v47 = vpack.c.bf16 %v665_v41, %v663_v43  ;;  %v678_v48 = vpack.c.bf16 %v664_v40, %v662_v42 }
  0xed   : > { %1202 = vrot.lane.b32.xlu1 %v2926_v5, %s4161_s26  ;;  %1507 = vmatprep.subr.bf16.mxu1 %v679_v47 }
  0xee   : > { %1200 = vrot.lane.b32.xlu0 %v2929_v6, %s4161_s26  ;;  %1508 = vmatpush1.bf16.msra.mxu1 %v678_v48 }
  0xef   : > { %v1105_v9 = vpop.permute.xlu1 %1104  ;;  %v1103_v50 = vpop.permute.xlu0 %1102 }
  0xf0   : > { %v1120_v51 = vsel %vm1118_vm4, %v1089_v45, %v1105_v9  ;;  %v1128_v5 = vsel %vm1118_vm4, %v1105_v9, %v1089_v45  ;;  %v1119_v52 = vsel %vm1118_vm4, %v1087_v46, %v1103_v50  ;;  %v1127_v53 = vsel %vm1118_vm4, %v1103_v50, %v1087_v46 }
  0xf1   : > { %v1150_v54 = vmul.f32 %v3403_v49, %v1120_v51  ;;  %v1151_v55 = vmul.f32 %v3406_v8, %v1128_v5  ;;  %v1148_v6 = vmul.f32 %v3403_v49, %v1119_v52  ;;  %v1149_v56 = vmul.f32 %v3406_v8, %v1127_v53  ;;  %798 = vrot.lane.b32.xlu1 %v2948_v12, %s2813_s17 }
  0xf2   : > { %796 = vrot.lane.b32.xlu0 %v2951_v13, %s2813_s17 }
  0xf3   : > { %v607_v57 = vpop.permute.xlu1 %606  ;;  %v605_v58 = vpop.permute.xlu0 %604  ;;  %v1165_v59 = vpack.c.bf16 %v1151_v55, %v1149_v56  ;;  %v1164_v60 = vpack.c.bf16 %v1150_v54, %v1148_v6 }
  0xf5   : > { %814 = vrot.lane.b32.xlu1 %v2954_v14, %s2813_s17  ;;  %1596 = vmatprep.subr.bf16.mxu0 %v1165_v59 }
  0xf6   : > { %812 = vrot.lane.b32.xlu0 %v2957_v15, %s2813_s17  ;;  %1597 = vmatpush1.bf16.msra.mxu0 %v1164_v60 }
  0xf7   : > { %v623_v61 = vpop.permute.xlu1 %622  ;;  %v621_v62 = vpop.permute.xlu0 %620 }
  0xf8   : > { %v636_v7 = vsel %vm632_vm3, %v607_v57, %v623_v61  ;;  %v644_v10 = vsel %vm632_vm3, %v623_v61, %v607_v57  ;;  %v635_v11 = vsel %vm632_vm3, %v605_v58, %v621_v62  ;;  %v643_v32 = vsel %vm632_vm3, %v621_v62, %v605_v58 }
  0xf9   : > { %v668_v33 = vmul.f32 %v3373_v63, %v644_v10  ;;  %v669_v3 = vmul.f32 %v3376_v4, %v636_v7  ;;  %v666_v1 = vmul.f32 %v3373_v63, %v643_v32  ;;  %v667_v16 = vmul.f32 %v3376_v4, %v635_v11  ;;  %1190 = vrot.lane.b32.xlu1 %v2948_v12, %s4161_s26 }
  0xfa   : > { %1188 = vrot.lane.b32.xlu0 %v2951_v13, %s4161_s26 }
  0xfb   : > { %v1093_v19 = vpop.permute.xlu1 %1092  ;;  %v1091_v2 = vpop.permute.xlu0 %1090  ;;  %v681_v22 = vpack.c.bf16 %v669_v3, %v667_v16  ;;  %v680_v0 = vpack.c.bf16 %v668_v33, %v666_v1 }
  0xfd   : > { %1206 = vrot.lane.b32.xlu1 %v2954_v14, %s4161_s26  ;;  %1509 = vmatprep.subr.bf16.mxu1 %v681_v22 }
  0xfe   : > { %1204 = vrot.lane.b32.xlu0 %v2957_v15, %s4161_s26  ;;  %1510 = vmatpush1.bf16.msra.mxu1 %v680_v0 }
  0xff   : > { %v1109_v23 = vpop.permute.xlu1 %1108  ;;  %v1107_v24 = vpop.permute.xlu0 %1106 }
 0x100   : > { %v1122_v12 = vsel %vm1118_vm4, %v1093_v19, %v1109_v23  ;;  %v1130_v13 = vsel %vm1118_vm4, %v1109_v23, %v1093_v19  ;;  %v1121_v25 = vsel %vm1118_vm4, %v1091_v2, %v1107_v24  ;;  %v1129_v29 = vsel %vm1118_vm4, %v1107_v24, %v1091_v2 }
 0x101   : > { %v1154_v14 = vmul.f32 %v3403_v49, %v1122_v12  ;;  %v1155_v30 = vmul.f32 %v3406_v8, %v1130_v13  ;;  %v1152_v15 = vmul.f32 %v3403_v49, %v1121_v25  ;;  %v1153_v31 = vmul.f32 %v3406_v8, %v1129_v29  ;;  %802 = vrot.lane.b32.xlu1 %v2974_v20, %s2813_s17 }
 0x102   : > { %800 = vrot.lane.b32.xlu0 %v2977_v21, %s2813_s17 }
 0x103   : > { %v611_v35 = vpop.permute.xlu1 %610  ;;  %v1167_v36 = vpack.c.bf16 %v1155_v30, %v1153_v31  ;;  %v1166_v37 = vpack.c.bf16 %v1154_v14, %v1152_v15  ;;  %v2543_v15 = vld [vmem:[%s4147_s1 + $0x4] sm:$0x3] }
 0x104   : > { %v609_v38 = vpop.permute.xlu0 %608 }
 0x105   : > { %818 = vrot.lane.b32.xlu1 %v2962_v17, %s2813_s17  ;;  %1598 = vmatprep.subr.bf16.mxu0 %v1167_v36 }
 0x106   : > { %816 = vrot.lane.b32.xlu0 %v2965_v18, %s2813_s17  ;;  %1599 = vmatpush1.bf16.msra.mxu0 %v1166_v37  ;;  %v3534_v37 = vrot.slane %v2543_v15, %v3085_v27 }
 0x107   : > { %v627_v39 = vpop.permute.xlu1 %626 }
 0x108   : > { %v638_v40 = vsel %vm632_vm3, %v611_v35, %v627_v39  ;;  %v646_v41 = vsel %vm632_vm3, %v627_v39, %v611_v35  ;;  %v625_v42 = vpop.permute.xlu0 %624  ;;  %v2686_v39 = vld [vmem:[%s4148_s2 + $0x34] ss:$20 sps:$4 sm:$0xff]  }
 0x109   : > { %v672_v43 = vmul.f32 %v3373_v63, %v646_v41  ;;  %v673_v44 = vmul.f32 %v3376_v4, %v638_v40  ;;  %v637_v45 = vsel %vm632_vm3, %v609_v38, %v625_v42  ;;  %v645_v46 = vsel %vm632_vm3, %v625_v42, %v609_v38  ;;  %1194 = vrot.lane.b32.xlu1 %v2974_v20, %s4161_s26 }
 0x10a   : > { %v670_v47 = vmul.f32 %v3373_v63, %v645_v46  ;;  %v671_v48 = vmul.f32 %v3376_v4, %v637_v45  ;;  %1192 = vrot.lane.b32.xlu0 %v2977_v21, %s4161_s26  ;;  %v3537_v38 = vrot.slane %v2543_v15, %v3091_v28 }
 0x10b   : > { %v1097_v9 = vpop.permute.xlu1 %1096 }
 0x10c   : > { %v1095_v50 = vpop.permute.xlu0 %1094  ;;  %v683_v51 = vpack.c.bf16 %v673_v44, %v671_v48  ;;  %v682_v5 = vpack.c.bf16 %v672_v43, %v670_v47 }
 0x10d   : > { %1210 = vrot.lane.b32.xlu1 %v2962_v17, %s4161_s26 }
 0x10e   : > { %1208 = vrot.lane.b32.xlu0 %v2965_v18, %s4161_s26  ;;  %1511 = vmatprep.subr.bf16.mxu1 %v683_v51  ;;  %s4171_s26 = smov 112  }
 0x10f   : > { %1512 = vmatpush1.bf16.msra.mxu1 %v682_v5  ;;  %v1113_v20 = vpop.permute.xlu1 %1112 }
 0x110   : > { %v1124_v52 = vsel %vm1118_vm4, %v1097_v9, %v1113_v20  ;;  %v1132_v53 = vsel %vm1118_vm4, %v1113_v20, %v1097_v9  ;;  %v1111_v21 = vpop.permute.xlu0 %1110  ;;  %v2688_v20 = vld [vmem:[%s4148_s2 + $0x30] ss:$20 sps:$4 sm:$0xff]  }
 0x111   : > { %v1158_v54 = vmul.f32 %v3403_v49, %v1124_v52  ;;  %v1159_v55 = vmul.f32 %v3406_v8, %v1132_v53  ;;  %v1123_v17 = vsel %vm1118_vm4, %v1095_v50, %v1111_v21  ;;  %v1131_v18 = vsel %vm1118_vm4, %v1111_v21, %v1095_v50  ;;  %v2689_v53 = vld [vmem:[%s4148_s2 + $0x5c] ss:$20 sps:$4 sm:$0xff]  }
 0x112   : > { %v1156_v6 = vmul.f32 %v3403_v49, %v1123_v17  ;;  %v1157_v56 = vmul.f32 %v3406_v8, %v1131_v18 }
 0x113   : > { %v615_v57 = vpop.permute.xlu1 %614 }
 0x114   : > { %v613_v58 = vpop.permute.xlu0 %612  ;;  %v1169_v59 = vpack.c.bf16 %v1159_v55, %v1157_v56  ;;  %v1168_v60 = vpack.c.bf16 %v1158_v54, %v1156_v6 }
 0x116   : > { %1600 = vmatprep.subr.bf16.mxu0 %v1169_v59 }
 0x117   : > { %1601 = vmatpush1.bf16.msra.mxu0 %v1168_v60  ;;  %v631_v61 = vpop.permute.xlu1 %630 }
 0x118   : > { %v640_v62 = vsel %vm632_vm3, %v615_v57, %v631_v61  ;;  %v648_v7 = vsel %vm632_vm3, %v631_v61, %v615_v57  ;;  %v629_v10 = vpop.permute.xlu0 %628 }
 0x119   : > { %v676_v11 = vmul.f32 %v3373_v63, %v648_v7  ;;  %v677_v32 = vmul.f32 %v3376_v4, %v640_v62  ;;  %v639_v33 = vsel %vm632_vm3, %v613_v58, %v629_v10  ;;  %v647_v3 = vsel %vm632_vm3, %v629_v10, %v613_v58  ;;  %v2691_v7 = vld [vmem:[%s4148_s2 + $0x58] ss:$20 sps:$4 sm:$0xff]  }
 0x11a   : > { %v674_v1 = vmul.f32 %v3373_v63, %v647_v3  ;;  %v675_v16 = vmul.f32 %v3376_v4, %v639_v33 }
 0x11b   : > { %v1101_v19 = vpop.permute.xlu1 %1100 }
 0x11c   : > { %v1099_v2 = vpop.permute.xlu0 %1098  ;;  %v685_v22 = vpack.c.bf16 %v677_v32, %v675_v16  ;;  %v684_v0 = vpack.c.bf16 %v676_v11, %v674_v1  ;;  %v2692_v11 = vld [vmem:[%s4148_s2 + $0x84] ss:$20 sps:$4 sm:$0xff]  }
 0x11e   : > { %1513 = vmatprep.subr.bf16.mxu1 %v685_v22 }
 0x11f   : > { %1514 = vmatpush1.bf16.msra.mxu1 %v684_v0  ;;  %v1117_v23 = vpop.permute.xlu1 %1116 }
 0x120   : > { %v1126_v24 = vsel %vm1118_vm4, %v1101_v19, %v1117_v23  ;;  %v1134_v12 = vsel %vm1118_vm4, %v1117_v23, %v1101_v19  ;;  %v1115_v13 = vpop.permute.xlu0 %1114 }
 0x121   : > { %v1162_v25 = vmul.f32 %v3403_v49, %v1126_v24  ;;  %v1163_v63 = vmul.f32 %v3406_v8, %v1134_v12  ;;  %v1125_v4 = vsel %vm1118_vm4, %v1099_v2, %v1115_v13  ;;  %v1133_v29 = vsel %vm1118_vm4, %v1115_v13, %v1099_v2 }
 0x122   : > { %v1160_v14 = vmul.f32 %v3403_v49, %v1125_v4  ;;  %v1161_v30 = vmul.f32 %v3406_v8, %v1133_v29  ;;  %v2683_v49 = vld [vmem:[%s4148_s2 + $0x8] ss:$20 sps:$4 sm:$0xff]  }
 0x123   : > { %v697_v31 = vpop.permute.xlu1 %696 }
 0x124   : > { %v695_v34 = vpop.permute.xlu0 %694  ;;  %v1171_v35 = vpack.c.bf16 %v1163_v63, %v1161_v30  ;;  %v1170_v36 = vpack.c.bf16 %v1162_v25, %v1160_v14  ;;  %v2694_v25 = vld [vmem:[%s4148_s2 + $0x80] ss:$20 sps:$4 sm:$0xff]  }
 0x126   : > { %1602 = vmatprep.subr.bf16.mxu0 %v1171_v35 }
 0x127   : > { %1603 = vmatpush1.bf16.msra.mxu0 %v1170_v36  ;;  %v713_v8 = vpop.permute.xlu1 %712 }
 0x128   : > { %v728_v40 = vsel %vm726_vm5, %v697_v31, %v713_v8  ;;  %v736_v41 = vsel %vm726_vm5, %v713_v8, %v697_v31  ;;  %v711_v42 = vpop.permute.xlu0 %710 }
 0x129   : > { %v758_v43 = vmul.f32 %v3534_v37, %v736_v41  ;;  %v759_v44 = vmul.f32 %v3537_v38, %v728_v40  ;;  %v727_v45 = vsel %vm726_vm5, %v695_v34, %v711_v42  ;;  %v735_v46 = vsel %vm726_vm5, %v711_v42, %v695_v34 }
 0x12a   : > { %v756_v47 = vmul.f32 %v3534_v37, %v735_v46  ;;  %v757_v48 = vmul.f32 %v3537_v38, %v727_v45  ;;  %1605 = vmatmul.mubr.bf16.vlgmr.msra.gmra.mrb[0].mxu0 %v2683_v49  ;;  %v2544_v49 = vld [vmem:[%s4147_s1 + $0x6] sm:$0x3] }
 0x12b   : > { %v701_v9 = vpop.permute.xlu1 %700  ;;  %1614 = vmatprep.mubr.bf16.mxu0 %v2686_v39  ;;  %v2815_v39 = vmov 0  }
 0x12c   : > { %v699_v50 = vpop.permute.xlu0 %698  ;;  %v773_v51 = vpack.c.bf16 %v759_v44, %v757_v48  ;;  %v772_v5 = vpack.c.bf16 %v758_v43, %v756_v47  ;;  %v3614_v43 = vrot.slane %v2544_v49, %v3085_v27 }
 0x12e   : > { %1515 = vmatprep.subr.bf16.mxu1 %v773_v51 }
 0x12f   : > { %1516 = vmatpush1.bf16.msra.mxu1 %v772_v5  ;;  %v717_v52 = vpop.permute.xlu1 %716 }
 0x130   : > { %v730_v21 = vsel %vm726_vm5, %v701_v9, %v717_v52  ;;  %v738_v54 = vsel %vm726_vm5, %v717_v52, %v701_v9  ;;  %v715_v55 = vpop.permute.xlu0 %714 }
 0x131   : > { %v762_v17 = vmul.f32 %v3534_v37, %v738_v54  ;;  %v763_v18 = vmul.f32 %v3537_v38, %v730_v21  ;;  %v729_v6 = vsel %vm726_vm5, %v699_v50, %v715_v55  ;;  %v737_v56 = vsel %vm726_vm5, %v715_v55, %v699_v50 }
 0x132   : > { %v760_v57 = vmul.f32 %v3534_v37, %v737_v56  ;;  %v761_v58 = vmul.f32 %v3537_v38, %v729_v6  ;;  %1615 = vmatmul.mubr.bf16.gmra.mrb[4].mxu0 %v2688_v20  ;;  %v2548_v20 = vld [vmem:[%s4147_s1 + $0x10] sm:$0x3] }
 0x133   : > { %v705_v59 = vpop.permute.xlu1 %704  ;;  %1624 = vmatprep.mubr.bf16.mxu0 %v2689_v53  ;;  %v3636_v55 = vrot.slane %v2548_v20, %v3085_v27 }
 0x134   : > { %v703_v60 = vpop.permute.xlu0 %702  ;;  %v775_v61 = vpack.c.bf16 %v763_v18, %v761_v58  ;;  %v774_v62 = vpack.c.bf16 %v762_v17, %v760_v57  ;;  %v3639_v17 = vrot.slane %v2548_v20, %v3091_v28 }
 0x136   : > { %1517 = vmatprep.subr.bf16.mxu1 %v775_v61 }
 0x137   : > { %1518 = vmatpush1.bf16.msra.mxu1 %v774_v62  ;;  %v721_v10 = vpop.permute.xlu1 %720 }
 0x138   : > { %v732_v32 = vsel %vm726_vm5, %v705_v59, %v721_v10  ;;  %v740_v33 = vsel %vm726_vm5, %v721_v10, %v705_v59  ;;  %v719_v3 = vpop.permute.xlu0 %718 }
 0x139   : > { %v766_v1 = vmul.f32 %v3534_v37, %v740_v33  ;;  %v767_v16 = vmul.f32 %v3537_v38, %v732_v32  ;;  %v731_v19 = vsel %vm726_vm5, %v703_v60, %v719_v3  ;;  %v739_v2 = vsel %vm726_vm5, %v719_v3, %v703_v60 }
 0x13a   : > { %v764_v22 = vmul.f32 %v3534_v37, %v739_v2  ;;  %v765_v0 = vmul.f32 %v3537_v38, %v731_v19  ;;  %1625 = vmatmul.mubr.bf16.gmra.mrb[8].mxu0 %v2691_v7 }
 0x13b   : > { %v709_v23 = vpop.permute.xlu1 %708  ;;  %1634 = vmatprep.mubr.bf16.mxu0 %v2692_v11 }
 0x13c   : > { %v707_v24 = vpop.permute.xlu0 %706  ;;  %v777_v12 = vpack.c.bf16 %v767_v16, %v765_v0  ;;  %v776_v13 = vpack.c.bf16 %v766_v1, %v764_v22 }
 0x13e   : > { %1519 = vmatprep.subr.bf16.mxu1 %v777_v12 }
 0x13f   : > { %1520 = vmatpush1.bf16.msra.mxu1 %v776_v13  ;;  %v725_v63 = vpop.permute.xlu1 %724 }
 0x140   : > { %v734_v4 = vsel %vm726_vm5, %v709_v23, %v725_v63  ;;  %v742_v29 = vsel %vm726_vm5, %v725_v63, %v709_v23  ;;  %v723_v14 = vpop.permute.xlu0 %722 }
 0x141   : > { %v770_v30 = vmul.f32 %v3534_v37, %v742_v29  ;;  %v771_v15 = vmul.f32 %v3537_v38, %v734_v4  ;;  %v733_v31 = vsel %vm726_vm5, %v707_v24, %v723_v14  ;;  %v741_v34 = vsel %vm726_vm5, %v723_v14, %v707_v24 }
 0x142   : > { %v768_v35 = vmul.f32 %v3534_v37, %v741_v34  ;;  %v769_v36 = vmul.f32 %v3537_v38, %v733_v31  ;;  %1635 = vmatmul.mubr.bf16.gmra.mrb[12].mxu0 %v2694_v25  ;;  %v3617_v37 = vrot.slane %v2544_v49, %v3091_v28 }
 0x143   : > { %v791_v8 = vpop.permute.xlu1 %790  ;;  %1677 = vmatprep.mubr.bf16.mxu0 %v2815_v39 }
 0x144   : > { %v789_v40 = vpop.permute.xlu0 %788  ;;  %v779_v41 = vpack.c.bf16 %v771_v15, %v769_v36  ;;  %v778_v42 = vpack.c.bf16 %v770_v30, %v768_v35 }
 0x146   : > { %1521 = vmatprep.subr.bf16.mxu1 %v779_v41 }
 0x147   : > { %1522 = vmatpush1.bf16.msra.mxu1 %v778_v42  ;;  %v807_v38 = vpop.permute.xlu1 %806 }
 0x148   : > { %v822_v44 = vsel %vm820_vm6, %v791_v8, %v807_v38  ;;  %v830_v45 = vsel %vm820_vm6, %v807_v38, %v791_v8  ;;  %v805_v46 = vpop.permute.xlu0 %804 }
 0x149   : > { %v852_v47 = vmul.f32 %v3614_v43, %v830_v45  ;;  %v853_v48 = vmul.f32 %v3617_v37, %v822_v44  ;;  %v821_v9 = vsel %vm820_vm6, %v789_v40, %v805_v46  ;;  %v829_v50 = vsel %vm820_vm6, %v805_v46, %v789_v40 }
 0x14a   : > { %v850_v51 = vmul.f32 %v3614_v43, %v829_v50  ;;  %v851_v5 = vmul.f32 %v3617_v37, %v821_v9 }
 0x14b   : > { %v1183_v52 = vpop.permute.xlu1 %1182 }
 0x14c   : > { %v1181_v53 = vpop.permute.xlu0 %1180  ;;  %v867_v21 = vpack.c.bf16 %v853_v48, %v851_v5  ;;  %v866_v54 = vpack.c.bf16 %v852_v47, %v850_v51 }
 0x14e   : > { %1523 = vmatprep.subr.bf16.mxu1 %v867_v21 }
 0x14f   : > { %1524 = vmatpush1.bf16.msra.mxu1 %v866_v54  ;;  %v1199_v18 = vpop.permute.xlu1 %1198 }
 0x150   : > { %v1214_v6 = vsel %vm1212_vm7, %v1183_v52, %v1199_v18  ;;  %v1222_v56 = vsel %vm1212_vm7, %v1199_v18, %v1183_v52  ;;  %v1197_v57 = vpop.permute.xlu0 %1196 }
 0x151   : > { %v1244_v58 = vmul.f32 %v3636_v55, %v1214_v6  ;;  %v1245_v59 = vmul.f32 %v3639_v17, %v1222_v56  ;;  %v1213_v60 = vsel %vm1212_vm7, %v1181_v53, %v1197_v57  ;;  %v1221_v61 = vsel %vm1212_vm7, %v1197_v57, %v1181_v53 }
 0x152   : > { %v1242_v62 = vmul.f32 %v3636_v55, %v1213_v60  ;;  %v1243_v7 = vmul.f32 %v3639_v17, %v1221_v61 }
 0x153   : > { %v795_v10 = vpop.permute.xlu1 %794 }
 0x154   : > { %v1258_v11 = vpack.c.bf16 %v1244_v58, %v1242_v62  ;;  %v793_v32 = vpop.permute.xlu0 %792  ;;  %v1259_v33 = vpack.c.bf16 %v1245_v59, %v1243_v7 }
 0x156   : > { %1645 = vmatprep.subr.bf16.mxu0 %v1259_v33 }
 0x157   : > { %1646 = vmatpush1.bf16.msra.mxu0 %v1258_v11  ;;  %v811_v3 = vpop.permute.xlu1 %810 }
 0x158   : > { %v824_v1 = vsel %vm820_vm6, %v795_v10, %v811_v3  ;;  %v832_v16 = vsel %vm820_vm6, %v811_v3, %v795_v10  ;;  %v809_v19 = vpop.permute.xlu0 %808 }
 0x159   : > { %v856_v2 = vmul.f32 %v3614_v43, %v832_v16  ;;  %v857_v22 = vmul.f32 %v3617_v37, %v824_v1  ;;  %v823_v0 = vsel %vm820_vm6, %v793_v32, %v809_v19  ;;  %v831_v23 = vsel %vm820_vm6, %v809_v19, %v793_v32 }
 0x15a   : > { %v854_v24 = vmul.f32 %v3614_v43, %v831_v23  ;;  %v855_v12 = vmul.f32 %v3617_v37, %v823_v0 }
 0x15b   : > { %v1187_v13 = vpop.permute.xlu1 %1186 }
 0x15c   : > { %v1185_v25 = vpop.permute.xlu0 %1184  ;;  %v869_v63 = vpack.c.bf16 %v857_v22, %v855_v12  ;;  %v868_v4 = vpack.c.bf16 %v856_v2, %v854_v24 }
 0x15e   : > { %1525 = vmatprep.subr.bf16.mxu1 %v869_v63 }
 0x15f   : > { %1526 = vmatpush1.bf16.msra.mxu1 %v868_v4  ;;  %v1203_v29 = vpop.permute.xlu1 %1202 }
 0x160   : > { %v1216_v14 = vsel %vm1212_vm7, %v1187_v13, %v1203_v29  ;;  %v1224_v30 = vsel %vm1212_vm7, %v1203_v29, %v1187_v13  ;;  %v1201_v15 = vpop.permute.xlu0 %1200  ;;  %v2695_v29 = vld [vmem:[%s4148_s2] ss:$20 sps:$4 sm:$0xff]  }
 0x161   : > { %v1248_v31 = vmul.f32 %v3636_v55, %v1216_v14  ;;  %v1249_v34 = vmul.f32 %v3639_v17, %v1224_v30  ;;  %v1215_v35 = vsel %vm1212_vm7, %v1185_v25, %v1201_v15  ;;  %v1223_v36 = vsel %vm1212_vm7, %v1201_v15, %v1185_v25  ;;  %v2699_v30 = vld [vmem:[%s4148_s2 + $0x2c] ss:$20 sps:$4 sm:$0xff]  }
 0x162   : > { %v1246_v49 = vmul.f32 %v3636_v55, %v1215_v35  ;;  %v1247_v8 = vmul.f32 %v3639_v17, %v1223_v36 }
 0x163   : > { %v799_v40 = vpop.permute.xlu1 %798 }
 0x164   : > { %v1260_v41 = vpack.c.bf16 %v1248_v31, %v1246_v49  ;;  %v797_v42 = vpop.permute.xlu0 %796  ;;  %v1261_v38 = vpack.c.bf16 %v1249_v34, %v1247_v8 }
 0x166   : > { %1647 = vmatprep.subr.bf16.mxu0 %v1261_v38  ;;  %v2701_v38 = vld [vmem:[%s4148_s2 + $0x28] ss:$20 sps:$4 sm:$0xff]  }
 0x167   : > { %1648 = vmatpush1.bf16.msra.mxu0 %v1260_v41  ;;  %v815_v44 = vpop.permute.xlu1 %814 }
 0x168   : > { %v826_v45 = vsel %vm820_vm6, %v799_v40, %v815_v44  ;;  %v834_v46 = vsel %vm820_vm6, %v815_v44, %v799_v40  ;;  %v813_v47 = vpop.permute.xlu0 %812  ;;  %v2705_v44 = vld [vmem:[%s4148_s2 + $0x50] ss:$20 sps:$4 sm:$0xff]  }
 0x169   : > { %v860_v48 = vmul.f32 %v3614_v43, %v834_v46  ;;  %v861_v9 = vmul.f32 %v3617_v37, %v826_v45  ;;  %v825_v50 = vsel %vm820_vm6, %v797_v42, %v813_v47  ;;  %v833_v51 = vsel %vm820_vm6, %v813_v47, %v797_v42  ;;  %v2698_v42 = vld [vmem:[%s4148_s2 + $0x10] ss:$20 sps:$4 sm:$0xff]   ;;  %v2706_v46 = vld [vmem:[%s4148_s2 + $0x60] ss:$20 sps:$4 sm:$0xff]   ;;  %v2709_v47 = vld [vmem:[%s4148_s2 + $0x78] ss:$20 sps:$4 sm:$0xff]  }
 0x16a   : > { %v858_v5 = vmul.f32 %v3614_v43, %v833_v51  ;;  %v859_v20 = vmul.f32 %v3617_v37, %v825_v50  ;;  %v2707_v45 = vld [vmem:[%s4148_s2 + $0x7c] ss:$20 sps:$4 sm:$0xff]   ;;  %v1370_v51 = vld [vmem:[%s4149_s3] sm:$0xff] }
 0x16b   : > { %v1191_v52 = vpop.permute.xlu1 %1190 }
 0x16c   : > { %v1189_v53 = vpop.permute.xlu0 %1188  ;;  %v871_v21 = vpack.c.bf16 %v861_v9, %v859_v20  ;;  %v870_v54 = vpack.c.bf16 %v860_v48, %v858_v5  ;;  %v2710_v48 = vld [vmem:[%s4148_s2 + $0x88] ss:$20 sps:$4 sm:$0xff]  }
 0x16d   : > { %v1371_v20 = vld [vmem:[%s4149_s3 + $0x8] sm:$0xff] }
 0x16e   : > { %1527 = vmatprep.subr.bf16.mxu1 %v871_v21 }
 0x16f   : > { %1528 = vmatpush1.bf16.msra.mxu1 %v870_v54  ;;  %v1207_v18 = vpop.permute.xlu1 %1206  ;;  %v1372_v54 = vld [vmem:[%s4149_s3 + $0x10] sm:$0xff] }
 0x170   : > { %v1218_v6 = vsel %vm1212_vm7, %v1191_v52, %v1207_v18  ;;  %v1226_v56 = vsel %vm1212_vm7, %v1207_v18, %v1191_v52  ;;  %v1205_v57 = vpop.permute.xlu0 %1204  ;;  %v1373_v18 = vld [vmem:[%s4149_s3 + $0x18] sm:$0xff] }
 0x171   : > { %v1252_v58 = vmul.f32 %v3636_v55, %v1218_v6  ;;  %v1253_v59 = vmul.f32 %v3639_v17, %v1226_v56  ;;  %v1217_v60 = vsel %vm1212_vm7, %v1189_v53, %v1205_v57  ;;  %v1225_v61 = vsel %vm1212_vm7, %v1205_v57, %v1189_v53 }
 0x172   : > { %v1250_v62 = vmul.f32 %v3636_v55, %v1217_v60  ;;  %v1251_v7 = vmul.f32 %v3639_v17, %v1225_v61 }
 0x173   : > { %v803_v10 = vpop.permute.xlu1 %802 }
 0x174   : > { %v1262_v11 = vpack.c.bf16 %v1252_v58, %v1250_v62  ;;  %v801_v32 = vpop.permute.xlu0 %800  ;;  %v1263_v33 = vpack.c.bf16 %v1253_v59, %v1251_v7 }
 0x176   : > { %1649 = vmatprep.subr.bf16.mxu0 %v1263_v33 }
 0x177   : > { %1650 = vmatpush1.bf16.msra.mxu0 %v1262_v11  ;;  %v819_v3 = vpop.permute.xlu1 %818 }
 0x178   : > { %v828_v1 = vsel %vm820_vm6, %v803_v10, %v819_v3  ;;  %v836_v16 = vsel %vm820_vm6, %v819_v3, %v803_v10  ;;  %v817_v19 = vpop.permute.xlu0 %816  ;;  %v1374_v10 = vld [vmem:[%s4149_s3 + $0x20] sm:$0xff] }
 0x179   : > { %v864_v2 = vmul.f32 %v3614_v43, %v836_v16  ;;  %v865_v22 = vmul.f32 %v3617_v37, %v828_v1  ;;  %v827_v0 = vsel %vm820_vm6, %v801_v32, %v817_v19  ;;  %v835_v23 = vsel %vm820_vm6, %v817_v19, %v801_v32  ;;  %v1375_v1 = vld [vmem:[%s4149_s3 + $0x28] sm:$0xff] }
 0x17a   : > { %v862_v24 = vmul.f32 %v3614_v43, %v835_v23  ;;  %v863_v12 = vmul.f32 %v3617_v37, %v827_v0 }
 0x17b   : > { %v1195_v13 = vpop.permute.xlu1 %1194 }
 0x17c   : > { %v1193_v25 = vpop.permute.xlu0 %1192  ;;  %v873_v63 = vpack.c.bf16 %v865_v22, %v863_v12  ;;  %v872_v4 = vpack.c.bf16 %v864_v2, %v862_v24  ;;  %v1376_v12 = vld [vmem:[%s4149_s3 + $0x30] sm:$0xff] }
 0x17e   : > { %1529 = vmatprep.subr.bf16.mxu1 %v873_v63 }
 0x17f   : > { %1530 = vmatpush1.bf16.msra.mxu1 %v872_v4  ;;  %v1211_v14 = vpop.permute.xlu1 %1210 }
 0x180   : > { %v1220_v43 = vsel %vm1212_vm7, %v1195_v13, %v1211_v14  ;;  %v1228_v37 = vsel %vm1212_vm7, %v1211_v14, %v1195_v13  ;;  %v1209_v15 = vpop.permute.xlu0 %1208  ;;  %v1377_v13 = vld [vmem:[%s4149_s3 + $0x38] sm:$0xff] }
 0x181   : > { %v1256_v31 = vmul.f32 %v3636_v55, %v1220_v43  ;;  %v1257_v34 = vmul.f32 %v3639_v17, %v1228_v37  ;;  %v1219_v35 = vsel %vm1212_vm7, %v1193_v25, %v1209_v15  ;;  %v1227_v36 = vsel %vm1212_vm7, %v1209_v15, %v1193_v25 }
 0x182   : > { %v1254_v49 = vmul.f32 %v3636_v55, %v1219_v35  ;;  %v1255_v8 = vmul.f32 %v3639_v17, %v1227_v36  ;;  %1532 = vmatmul.mubr.bf16.vlgmr.msra.gmra.mrb[0].mxu1 %v2695_v29  ;;  %v2703_v55 = vld [vmem:[%s4148_s2 + $0x54] ss:$20 sps:$4 sm:$0xff]   ;;  %v2702_v17 = vld [vmem:[%s4148_s2 + $0x38] ss:$20 sps:$4 sm:$0xff]  }
 0x183   : > { %1541 = vmatprep.mubr.bf16.mxu1 %v2699_v30 }
 0x184   : > { %v1264_v40 = vpack.c.bf16 %v1256_v31, %v1254_v49  ;;  %v1265_v41 = vpack.c.bf16 %v1257_v34, %v1255_v8  ;;  %v1378_v31 = vld [vmem:[%s4149_s3 + $0x40] sm:$0xff]  ;;  %v1379_v8 = vld [vmem:[%s4149_s3 + $0x48] sm:$0xff] }
 0x186   : > { %1651 = vmatprep.subr.bf16.mxu0 %v1265_v41 }
 0x187   : > { %1652 = vmatpush1.bf16.msra.mxu0 %v1264_v40 }
 0x18a   : > { %2569 = vmatmul.mubr.msk.bf16.vlgmr.msra.gmra.mrb[0].mxu0 %vm1486_vm8, %v2698_v42  ;;  %1542 = vmatmul.mubr.bf16.gmra.mrb[4].mxu1 %v2701_v38 }
 0x18b   : > { %1687 = vmatprep.mubr.bf16.mxu0 %v2815_v39  ;;  %1551 = vmatprep.mubr.bf16.mxu1 %v2703_v55 }
 0x192   : > { %2570 = vmatmul.mubr.msk.bf16.gmra.mrb[4].mxu0 %vm1486_vm8, %v2702_v17  ;;  %1552 = vmatmul.mubr.bf16.gmra.mrb[8].mxu1 %v2705_v44 }
 0x193   : > { %1697 = vmatprep.mubr.bf16.mxu0 %v2815_v39  ;;  %1561 = vmatprep.mubr.bf16.mxu1 %v2707_v45  ;;  %v1380_v45 = vld [vmem:[%s4149_s3 + $0x50] sm:$0xff] }
 0x19a   : > { %2571 = vmatmul.mubr.msk.bf16.gmra.mrb[8].mxu0 %vm1486_vm8, %v2706_v46  ;;  %1562 = vmatmul.mubr.bf16.gmra.mrb[12].mxu1 %v2709_v47  ;;  %v1381_v47 = vld [vmem:[%s4149_s3 + $0x58] sm:$0xff] }
 0x19b   : > { %1707 = vmatprep.mubr.bf16.mxu0 %v2815_v39  ;;  %1884 = vmatprep.mubr.bf16.mxu1 %v2815_v39 }
 0x1a2   : > { %2572 = vmatmul.mubr.msk.bf16.gmra.mrb[12].mxu0 %vm1486_vm8, %v2710_v48 }
 0x255   : > { %v1533_v9 = vpop.f32.mrb[0].mxu1 }
 0x256   : > { %v1535_v50 = vpop.f32.mrb[1].mxu1  ;;  %v1534_v53 = vadd.f32 %v1533_v9, %v1370_v51 }
 0x257   : > { %v1537_v5 = vpop.f32.mrb[2].mxu1  ;;  %v1536_v21 = vadd.f32 %v1535_v50, %v1371_v20 }
 0x258   : > { %v1539_v52 = vpop.f32.mrb[3].mxu1  ;;  %v1538_v57 = vadd.f32 %v1537_v5, %v1372_v54 }
 0x259   : > { %v1540_v61 = vadd.f32 %v1539_v52, %v1373_v18 }
 0x25d   : > { %v1679_v6 = vpop.f32.mrb[0].mxu0  ;;  %v1543_v56 = vpop.f32.mrb[4].mxu1 }
 0x25e   : > { %v2619_v58 = vadd.f32 %v1679_v6, %v1534_v53  ;;  %v1681_v59 = vpop.f32.mrb[1].mxu0  ;;  %v1545_v60 = vpop.f32.mrb[5].mxu1  ;;  %v1544_v0 = vadd.f32 %v1543_v56, %v1374_v10 }
 0x25f   : > { %v2621_v62 = vadd.f32 %v1681_v59, %v1536_v21  ;;  %v1683_v7 = vpop.f32.mrb[2].mxu0  ;;  %v1547_v11 = vpop.f32.mrb[6].mxu1  ;;  %v1546_v24 = vadd.f32 %v1545_v60, %v1375_v1  ;;  %v1382_v59 = vld [vmem:[%s4149_s3 + $0x60] sm:$0xff] }
 0x260   : > { %v2573_v32 = vmul.f32 -1.442695, %v2619_v58  ;;  %v2623_v33 = vadd.f32 %v1683_v7, %v1538_v57  ;;  %v1685_v3 = vpop.f32.mrb[3].mxu0  ;;  %v1549_v16 = vpop.f32.mrb[7].mxu1  ;;  %v1548_v4 = vadd.f32 %v1547_v11, %v1376_v12  ;;  %v1383_v11 = vld [vmem:[%s4149_s3 + $0x68] sm:$0xff] }
 0x261   : > { %v2574_v19 = vmul.f32 -1.442695, %v2621_v62  ;;  %v2625_v2 = vadd.f32 %v1685_v3, %v1540_v61  ;;  %v1550_v43 = vadd.f32 %v1549_v16, %v1377_v13 }
 0x262   : > { %2719 = vpow2.f32 %v2573_v32  ;;  %v2575_v22 = vmul.f32 -1.442695, %v2623_v33 }
 0x263   : > { %2721 = vpow2.f32 %v2574_v19  ;;  %v2576_v23 = vmul.f32 -1.442695, %v2625_v2 }
 0x264   : > { %2723 = vpow2.f32 %v2575_v22  ;;  %v1384_v22 = vld [vmem:[%s4149_s3 + $0x70] sm:$0xff] }
 0x265   : > { %2725 = vpow2.f32 %v2576_v23  ;;  %v1689_v25 = vpop.f32.mrb[4].mxu0  ;;  %v1553_v63 = vpop.f32.mrb[8].mxu1  ;;  %v1385_v23 = vld [vmem:[%s4149_s3 + $0x78] sm:$0xff] }
 0x266   : > { %v2627_v29 = vadd.f32 %v1689_v25, %v1544_v0  ;;  %v1691_v14 = vpop.f32.mrb[5].mxu0  ;;  %v1555_v30 = vpop.f32.mrb[9].mxu1  ;;  %v1554_v55 = vadd.f32 %v1553_v63, %v1378_v31 }
 0x267   : > { %v2629_v37 = vadd.f32 %v1691_v14, %v1546_v24  ;;  %v1693_v15 = vpop.f32.mrb[6].mxu0  ;;  %v1557_v34 = vpop.f32.mrb[10].mxu1  ;;  %v1556_v44 = vadd.f32 %v1555_v30, %v1379_v8 }
 0x268   : > { %v2577_v35 = vmul.f32 -1.442695, %v2627_v29  ;;  %v2631_v36 = vadd.f32 %v1693_v15, %v1548_v4  ;;  %v1695_v49 = vpop.f32.mrb[7].mxu0  ;;  %v1559_v40 = vpop.f32.mrb[11].mxu1  ;;  %v1558_v52 = vadd.f32 %v1557_v34, %v1380_v45  ;;  %v2783_v45 = vld [vmem:[%s2905_s18] sm:$0xff] }
 0x269   : > { %v2578_v41 = vmul.f32 -1.442695, %v2629_v37  ;;  %v2633_v42 = vadd.f32 %v1695_v49, %v1550_v43  ;;  %v1560_v56 = vadd.f32 %v1559_v40, %v1381_v47  ;;  %v2784_v47 = vld [vmem:[%s2905_s18 + $0x10] sm:$0xff] }
 0x26a   : > { %2727 = vpow2.f32 %v2577_v35  ;;  %v2579_v38 = vmul.f32 -1.442695, %v2631_v36 }
 0x26b   : > { %2729 = vpow2.f32 %v2578_v41  ;;  %v2580_v17 = vmul.f32 -1.442695, %v2633_v42 }
 0x26c   : > { %v2720_v46 = vpop.eup %2719  ;;  %2731 = vpow2.f32 %v2579_v38 }
 0x26d   : > { %v2722_v48 = vpop.eup %2721  ;;  %v1766_v9 = vadd.f32 1.0, %v2720_v46  ;;  %2733 = vpow2.f32 %v2580_v17  ;;  %v1699_v50 = vpop.f32.mrb[8].mxu0 }
 0x26e   : > { %v1563_v51 = vpop.f32.mrb[12].mxu1  ;;  %v2724_v5 = vpop.eup %2723  ;;  %v1767_v20 = vadd.f32 1.0, %v2722_v48  ;;  %v2635_v53 = vadd.f32 %v1699_v50, %v1554_v55  ;;  %v2785_v50 = vld [vmem:[%s2905_s18 + $0x8] sm:$0xff] }
 0x26f   : > { %v1701_v21 = vpop.f32.mrb[9].mxu0  ;;  %v1565_v54 = vpop.f32.mrb[13].mxu1  ;;  %2735 = vrcp.f32 %v1766_v9  ;;  %v1768_v6 = vadd.f32 1.0, %v2724_v5  ;;  %v1564_v16 = vadd.f32 %v1563_v51, %v1382_v59  ;;  %v2786_v5 = vld [vmem:[%s2905_s18 + $0x18] sm:$0xff] }
 0x270   : > { %v2726_v18 = vpop.eup %2725  ;;  %v2637_v57 = vadd.f32 %v1701_v21, %v1556_v44  ;;  %v1703_v58 = vpop.f32.mrb[10].mxu0  ;;  %2737 = vrcp.f32 %v1767_v20  ;;  %v2581_v62 = vmul.f32 -1.442695, %v2635_v53  ;;  %v1566_v2 = vadd.f32 %v1565_v54, %v1383_v11  ;;  %v2788_v11 = vld [vmem:[%s2905_s18 + $0x30] sm:$0xff] }
 0x271   : > { %v1567_v60 = vpop.f32.mrb[14].mxu1  ;;  %v1769_v61 = vadd.f32 1.0, %v2726_v18  ;;  %v2639_v7 = vadd.f32 %v1703_v58, %v1558_v52  ;;  %v1705_v10 = vpop.f32.mrb[11].mxu0  ;;  %2739 = vrcp.f32 %v1768_v6 }
 0x272   : > { %v1569_v32 = vpop.f32.mrb[15].mxu1  ;;  %v2582_v33 = vmul.f32 -1.442695, %v2637_v57  ;;  %v2641_v3 = vadd.f32 %v1705_v10, %v1560_v56  ;;  %v1568_v4 = vadd.f32 %v1567_v60, %v1384_v22 }
 0x273   : > { %2741 = vrcp.f32 %v1769_v61  ;;  %v2583_v1 = vmul.f32 -1.442695, %v2639_v7  ;;  %v1570_v37 = vadd.f32 %v1569_v32, %v1385_v23  ;;  %v2787_v7 = vld [vmem:[%s2905_s18 + $0x20] sm:$0xff] }
 0x274   : > { %2743 = vpow2.f32 %v2581_v62  ;;  %v2584_v19 = vmul.f32 -1.442695, %v2641_v3  ;;  %v2728_v0 = vpop.eup %2727  ;;  %v2789_v3 = vld [vmem:[%s2905_s18 + $0x28] sm:$0xff] }
 0x275   : > { %2745 = vpow2.f32 %v2582_v33  ;;  %v2730_v24 = vpop.eup %2729  ;;  %v1770_v12 = vadd.f32 1.0, %v2728_v0  ;;  %v1709_v13 = vpop.f32.mrb[12].mxu0 }
 0x276   : > { %2747 = vpow2.f32 %v2583_v1  ;;  %v2732_v25 = vpop.eup %2731  ;;  %v1771_v63 = vadd.f32 1.0, %v2730_v24  ;;  %v2643_v29 = vadd.f32 %v1709_v13, %v1564_v16  ;;  %v1711_v14 = vpop.f32.mrb[13].mxu0  ;;  %v2790_v16 = vld [vmem:[%s2905_s18 + $0x38] sm:$0xff] }
 0x277   : > { %2749 = vpow2.f32 %v2584_v19  ;;  %v2734_v30 = vpop.eup %2733  ;;  %v1772_v43 = vadd.f32 1.0, %v2732_v25  ;;  %v2645_v15 = vadd.f32 %v1711_v14, %v1566_v2  ;;  %v1713_v31 = vpop.f32.mrb[14].mxu0 }
 0x278   : > { %2751 = vrcp.f32 %v1770_v12  ;;  %v1773_v34 = vadd.f32 1.0, %v2734_v30  ;;  %v2585_v35 = vmul.f32 -1.442695, %v2643_v29  ;;  %v2647_v36 = vadd.f32 %v1713_v31, %v1568_v4  ;;  %v1715_v49 = vpop.f32.mrb[15].mxu0 }
 0x279   : > { %2753 = vrcp.f32 %v1771_v63  ;;  %v2736_v8 = vpop.eup %2735  ;;  %v2586_v40 = vmul.f32 -1.442695, %v2645_v15  ;;  %v2649_v41 = vadd.f32 %v1715_v49, %v1570_v37  ;;  %v2792_v15 = vld [vmem:[%s2905_s18 + $0x50] sm:$0xff] }
 0x27a   : > { %2755 = vrcp.f32 %v1772_v43  ;;  %v2738_v42 = vpop.eup %2737  ;;  %v2587_v38 = vmul.f32 -1.442695, %v2647_v36  ;;  %v1814_v46 = vmul.f32 %v2783_v45, %v2736_v8  ;;  %v2791_v43 = vld [vmem:[%s2905_s18 + $0x40] sm:$0xff]  ;;  %v2794_v36 = vld [vmem:[%s2905_s18 + $0x58] sm:$0xff]  ;;  %v2796_v45 = vld [vmem:[%s2905_s18 + $0x70] sm:$0xff] }
 0x27b   : > { %2757 = vrcp.f32 %v1773_v34  ;;  %v2740_v55 = vpop.eup %2739  ;;  %v2588_v17 = vmul.f32 -1.442695, %v2649_v41  ;;  %v1815_v51 = vmul.f32 %v2785_v50, %v2738_v42  ;;  %v2793_v34 = vld [vmem:[%s2905_s18 + $0x48] sm:$0xff] }
 0x27c   : > { %2759 = vpow2.f32 %v2585_v35  ;;  %v1816_v48 = vmul.f32 %v2784_v47, %v2740_v55  ;;  %v2797_v47 = vld [vmem:[%s2905_s18 + $0x68] sm:$0xff] }
 0x27d   : > { %v2742_v44 = vpop.eup %2741  ;;  %2761 = vpow2.f32 %v2586_v40 }
 0x27e   : > { %v2744_v9 = vpop.eup %2743  ;;  %2763 = vpow2.f32 %v2587_v38  ;;  %v1817_v20 = vmul.f32 %v2786_v5, %v2742_v44  ;;  %v1832_v21 = vpack.c.bf16 %v1816_v48, %v1814_v46 }
 0x27f   : > { %v2746_v52 = vpop.eup %2745  ;;  %v1774_v53 = vadd.f32 1.0, %v2744_v9  ;;  %2765 = vpow2.f32 %v2588_v17  ;;  %v2795_v17 = vld [vmem:[%s2905_s18 + $0x60] sm:$0xff]  ;;  %v2798_v9 = vld [vmem:[%s2905_s18 + $0x78] sm:$0xff]  ;;  %s2616_s18 = sshll.u32 %s4174_s30, 3 }
 0x280   : > { %v2748_v54 = vpop.eup %2747  ;;  %v1775_v18 = vadd.f32 1.0, %v2746_v52  ;;  %v1833_v6 = vpack.c.bf16 %v1817_v20, %v1815_v51  ;;  %v2711_v20 = vld [vmem:[%s4150_s4] sm:$0xff]   ;;  %s482_s19 = scalar_lea.vmem %s4154_s8, %s2616_s18 }
 0x281   : > { %v2750_v56 = vpop.eup %2749  ;;  %2767 = vrcp.f32 %v1774_v53  ;;  %v1776_v57 = vadd.f32 1.0, %v2748_v54  ;;  %v1840_v52 = vld [vmem:[%s4151_s5] sm:$0xff]  ;;  %v1841_v53 = vld [vmem:[%s4151_s5 + $0x8] sm:$0xff]  ;;  %v1842_v54 = vld [vmem:[%s4151_s5 + $0x10] sm:$0xff] }
 0x282   : > { %v2752_v58 = vpop.eup %2751  ;;  %2769 = vrcp.f32 %v1775_v18  ;;  %v1777_v59 = vadd.f32 1.0, %v2750_v56  ;;  %1852 = vmatprep.subr.bf16.mxu1 %v1833_v6  ;;  %v1843_v56 = vld [vmem:[%s4151_s5 + $0x18] sm:$0xff] }
 0x283   : > { %v2754_v60 = vpop.eup %2753  ;;  %2771 = vrcp.f32 %v1776_v57  ;;  %1853 = vmatpush1.bf16.msra.mxu1 %v1832_v21  ;;  %v1818_v10 = vmul.f32 %v2787_v7, %v2752_v58 }
 0x284   : > { %v2756_v61 = vpop.eup %2755  ;;  %2773 = vrcp.f32 %v1777_v59  ;;  %v1819_v1 = vmul.f32 %v2789_v3, %v2754_v60 }
 0x285   : > { %v2758_v62 = vpop.eup %2757  ;;  %v1820_v32 = vmul.f32 %v2788_v11, %v2756_v61 }
 0x286   : > { %v2760_v33 = vpop.eup %2759  ;;  %v1821_v19 = vmul.f32 %v2790_v16, %v2758_v62 }
 0x287   : > { %v2762_v2 = vpop.eup %2761  ;;  %v1778_v22 = vadd.f32 1.0, %v2760_v33  ;;  %v1834_v0 = vpack.c.bf16 %v1820_v32, %v1818_v10  ;;  %v1973_v10 = vld [vmem:[%s482_s19] sm:$0xff] }
 0x288   : > { %v2764_v23 = vpop.eup %2763  ;;  %v1779_v24 = vadd.f32 1.0, %v2762_v2  ;;  %v1835_v12 = vpack.c.bf16 %v1821_v19, %v1819_v1  ;;  %v2596_v1 = vcombine.high %v1973_v10, %v1973_v10  ;;  %v2595_v16 = vcombine.low %v1973_v10, %v1973_v10  ;;  %v2712_v19 = vld [vmem:[%s4152_s6] sm:$0xff]  }
 0x289   : > { %v2766_v13 = vpop.eup %2765  ;;  %2775 = vrcp.f32 %v1778_v22  ;;  %v1780_v25 = vadd.f32 1.0, %v2764_v23  ;;  %v2715_v22 = vld [vmem:[%s4155_s9] sm:$0xff]  }
 0x28a   : > { %2777 = vrcp.f32 %v1779_v24  ;;  %v1781_v63 = vadd.f32 1.0, %v2766_v13  ;;  %1854 = vmatprep.subr.bf16.mxu1 %v1835_v12  ;;  %v1998_v2 = vsel %vm1996_vm9, %v2595_v16, 0  ;;  %v1903_v23 = vld [vmem:[%s4153_s7] sm:$0xff]  ;;  %v1904_v24 = vld [vmem:[%s4153_s7 + $0x8] sm:$0xff]  ;;  %v1905_v13 = vld [vmem:[%s4153_s7 + $0x10] sm:$0xff] }
 0x28b   : > { %v2768_v4 = vpop.eup %2767  ;;  %2779 = vrcp.f32 %v1780_v25  ;;  %1855 = vmatpush1.bf16.msra.mxu1 %v1834_v0  ;;  %v2716_v0 = vld [vmem:[%s4155_s9 + $0x8] sm:$0xff]  }
 0x28c   : > { %v2770_v29 = vpop.eup %2769  ;;  %2781 = vrcp.f32 %v1781_v63  ;;  %v1822_v37 = vmul.f32 %v2791_v43, %v2768_v4  ;;  %v1906_v63 = vld [vmem:[%s4153_s7 + $0x18] sm:$0xff] }
 0x28d   : > { %v2772_v14 = vpop.eup %2771  ;;  %v1823_v35 = vmul.f32 %v2793_v34, %v2770_v29 }
 0x28e   : > { %v2774_v30 = vpop.eup %2773  ;;  %v1824_v31 = vmul.f32 %v2792_v15, %v2772_v14  ;;  %v2058_v14 = vld [vmem:[%s4156_s10] sm:$0x3]  ;;  %v2600_v15 = vld [vmem:[%s4156_s10 + $0x2] sm:$0x3] }
 0x28f   : > { %v1825_v49 = vmul.f32 %v2794_v36, %v2774_v30 }
 0x290   : > { %v1836_v8 = vpack.c.bf16 %v1824_v31, %v1822_v37 }
 0x291   : > { %v1837_v40 = vpack.c.bf16 %v1825_v49, %v1823_v35  ;;  %v2063_v35 = vrot.slane %v2058_v14, %v3085_v27 }
 0x293   : > { %v2776_v41 = vpop.eup %2775  ;;  %1856 = vmatprep.subr.bf16.mxu1 %v1837_v40 }
 0x294   : > { %v2778_v42 = vpop.eup %2777  ;;  %1857 = vmatpush1.bf16.msra.mxu1 %v1836_v8  ;;  %v1826_v44 = vmul.f32 %v2795_v17, %v2776_v41  ;;  %v2067_v8 = vrot.slane %v2058_v14, %v3091_v28  ;;  %v2080_v41 = vrot.slane %v2600_v15, %v3085_v27  ;;  %v2084_v17 = vrot.slane %v2600_v15, %v3091_v28 }
 0x295   : > { %v2780_v38 = vpop.eup %2779  ;;  %v1827_v48 = vmul.f32 %v2797_v47, %v2778_v42  ;;  %v2057_v47 = vld [vmem:[%s4157_s11 + $0x8] sm:$0xff] }
 0x296   : > { %v2782_v55 = vpop.eup %2781  ;;  %v1828_v46 = vmul.f32 %v2796_v45, %v2780_v38 }
 0x297   : > { %v1829_v50 = vmul.f32 %v2798_v9, %v2782_v55  ;;  %v2056_v55 = vld [vmem:[%s4157_s11] sm:$0xff] }
 0x298   : > { %v1838_v51 = vpack.c.bf16 %v1828_v46, %v1826_v44 }
 0x299   : > { %v1839_v5 = vpack.c.bf16 %v1829_v50, %v1827_v48  ;;  %v2601_v50 = vld [vmem:[%s4156_s10 + $0x4] sm:$0x3] }
 0x29b   : > { %1858 = vmatprep.subr.bf16.mxu1 %v1839_v5 }
 0x29c   : > { %1859 = vmatpush1.bf16.msra.mxu1 %v1838_v51 }
 0x29f   : > { %2590 = vmatmul.mubr.msk.bf16.vlgmr.msra.gmra.mrb[16].mxu1 %vm1486_vm8, %v2711_v20 }
 0x2a0   : > { %1948 = vmatprep.mubr.bf16.mxu1 %v2815_v39 }
 0x372   : > { %v1886_v21 = vpop.f32.mrb[16].mxu1 }
 0x373   : > { %v1887_v18 = vadd.f32 %v1886_v21, %v1840_v52  ;;  %v1888_v6 = vpop.f32.mrb[17].mxu1  ;;  %v2602_v21 = vld [vmem:[%s4156_s10 + $0x6] sm:$0x3] }
 0x374   : > { %v1889_v57 = vadd.f32 %v1888_v6, %v1841_v53  ;;  %v1890_v58 = vpop.f32.mrb[18].mxu1 }
 0x375   : > { %v1891_v59 = vadd.f32 %v1890_v58, %v1842_v54  ;;  %v1892_v60 = vpop.f32.mrb[19].mxu1  ;;  %v1895_v62 = vmax.f32 %v1887_v18, 0.0  ;;  %v2097_v18 = vrot.slane %v2601_v50, %v3085_v27 }
 0x376   : > { %v1893_v61 = vadd.f32 %v1892_v60, %v1843_v56  ;;  %v1896_v11 = vmax.f32 %v1889_v57, 0.0  ;;  %v2101_v56 = vrot.slane %v2601_v50, %v3091_v28  ;;  %v2114_v57 = vrot.slane %v2602_v21, %v3085_v27 }
 0x377   : > { %v1897_v7 = vmax.f32 %v1891_v59, 0.0  ;;  %v2118_v59 = vrot.slane %v2602_v21, %v3091_v28 }
 0x378   : > { %v1898_v32 = vmax.f32 %v1893_v61, 0.0 }
 0x379   : > { %v1901_v33 = vpack.c.bf16 %v1897_v7, %v1895_v62 }
 0x37a   : > { %v1902_v3 = vpack.c.bf16 %v1898_v32, %v1896_v11 }
 0x37c   : > { %1916 = vmatprep.subr.bf16.mxu1 %v1902_v3 }
 0x37d   : > { %1917 = vmatpush1.bf16.msra.mxu1 %v1901_v33 }
 0x37e   : > { %2597 = vmatprep.subr.msk.bf16.mxu1 %vm1996_vm9, %v2596_v1 }
 0x380   : > { %2592 = vmatmul.mubr.msk.bf16.vlgmr.msra.gmra.mrb[20].mxu1 %vm1912_vm10, %v2712_v19 }
 0x381   : > { %2004 = vmatpush1.bf16.msra.mxu1 %v1998_v2  ;;  %2035 = vmatprep.mubr.bf16.mxu1 %v2815_v39 }
 0x388   : > { %2598 = vmatmul.mubr.msk.bf16.vlgmr.msra.gmra.mrb[24].mxu1 %vm1989_vm11, %v2715_v22 }
 0x389   : > { %2045 = vmatprep.mubr.bf16.mxu1 %v2815_v39 }
 0x390   : > { %2599 = vmatmul.mubr.msk.bf16.gmra.mrb[28].mxu1 %vm1989_vm11, %v2716_v0  ;;  %v3976_v0 = vld [vmem:[%s4158_s12] sm:$0xff] }
 0x453   : > { %v1950_v12 = vpop.f32.mrb[20].mxu1 }
 0x454   : > { %v1951_v25 = vadd.f32 %v1950_v12, %v1903_v23  ;;  %v1952_v39 = vpop.f32.mrb[21].mxu1  ;;  %v2611_v23 = vcombine.high %v3976_v0, %v3976_v0 }
 0x455   : > { %v1953_v4 = vadd.f32 %v1952_v39, %v1904_v24  ;;  %v1954_v29 = vpop.f32.mrb[22].mxu1 }
 0x456   : > { %v1955_v30 = vadd.f32 %v1954_v29, %v1905_v13  ;;  %v1956_v43 = vpop.f32.mrb[23].mxu1  ;;  %v1959_v31 = vmax.f32 %v1951_v25, 0.0  ;;  %2612 = vmatprep.mubr.msk.bf16.mxu0 %vm1912_vm10, %v2611_v23 }
 0x457   : > { %v1957_v37 = vadd.f32 %v1956_v43, %v1906_v63  ;;  %v1960_v36 = vmax.f32 %v1953_v4, 0.0 }
 0x458   : > { %v1961_v34 = vmax.f32 %v1955_v30, 0.0 }
 0x459   : > { %v1962_v49 = vmax.f32 %v1957_v37, 0.0 }
 0x45a   : > { %v1963_v40 = vadd.f32 %v1961_v34, %v1959_v31 }
 0x45b   : > { %v1964_v42 = vadd.f32 %v1962_v49, %v1960_v36  ;;  %v2037_v38 = vpop.f32.mrb[24].mxu1 }
 0x45c   : > { %v3888_v44 = vmul.f32 0.5, %v1963_v40  ;;  %v2070_v45 = vmul.f32 %v2063_v35, %v2037_v38  ;;  %v2039_v46 = vpop.f32.mrb[25].mxu1  ;;  %v2143_v35 = vld [vmem:[%s4147_s1] sm:$0x3] }
 0x45d   : > { %v2071_v48 = vmul.f32 %v2067_v8, %v2039_v46  ;;  %v2041_v9 = vpop.f32.mrb[26].mxu1  ;;  %v3911_v16 = vmul.f32 0.5, %v1964_v42  ;;  %v2148_v8 = vrot.slane %v2143_v35, %v3085_v27  ;;  %v2152_v40 = vrot.slane %v2143_v35, %v3091_v28 }
 0x45e   : > { %v2072_v51 = vadd.f32 %v2070_v45, %v2056_v55  ;;  %2131 = vrot.lane.b32.xlu0 %v3888_v44, %s2808_s20  ;;  %v2087_v5 = vmul.f32 %v2080_v41, %v2041_v9  ;;  %v2043_v20 = vpop.f32.mrb[27].mxu1  ;;  %v2603_v41 = vld [vmem:[%s4147_s1 + $0x2] sm:$0x3] }
 0x45f   : > { %v2073_v52 = vadd.f32 %v2071_v48, %v2057_v47  ;;  %v2088_v53 = vmul.f32 %v2084_v17, %v2043_v20  ;;  %v2180_v45 = vrot.slane %v2603_v41, %v3085_v27  ;;  %v2184_v46 = vrot.slane %v2603_v41, %v3091_v28 }
 0x460   : > { %v2089_v54 = vadd.f32 %v2087_v5, %v2072_v51  ;;  %v2604_v51 = vld [vmem:[%s4147_s1 + $0x4] sm:$0x3] }
 0x461   : > { %v2090_v6 = vadd.f32 %v2088_v53, %v2073_v52 }
 0x462   : > { %2163 = vrot.lane.b32.xlu0 %v3888_v44, %s2810_s22 }
 0x463   : > { %v2047_v58 = vpop.f32.mrb[28].mxu1 }
 0x464   : > { %v2104_v60 = vmul.f32 %v2097_v18, %v2047_v58  ;;  %v2049_v61 = vpop.f32.mrb[29].mxu1 }
 0x465   : > { %v2105_v62 = vmul.f32 %v2101_v56, %v2049_v61  ;;  %v2051_v7 = vpop.f32.mrb[30].mxu1  ;;  %v2212_v56 = vrot.slane %v2604_v51, %v3085_v27 }
 0x466   : > { %v2106_v10 = vadd.f32 %v2104_v60, %v2089_v54  ;;  %v2121_v11 = vmul.f32 %v2114_v57, %v2051_v7  ;;  %v2053_v32 = vpop.f32.mrb[31].mxu1  ;;  %2195 = vrot.lane.b32.xlu0 %v3888_v44, %s2812_s16  ;;  %v2216_v57 = vrot.slane %v2604_v51, %v3091_v28 }
 0x467   : > { %v2107_v33 = vadd.f32 %v2105_v62, %v2090_v6  ;;  %v2122_v3 = vmul.f32 %v2118_v59, %v2053_v32  ;;  %v2605_v62 = vld [vmem:[%s4147_s1 + $0x6] sm:$0x3] }
 0x468   : > { %v3909_v1 = vadd.f32 %v2121_v11, %v2106_v10 }
 0x469   : > { %v3913_v19 = vadd.f32 %v2122_v3, %v2107_v33 }
 0x46a   : > { %2133 = vrot.lane.b32.xlu1 %v3909_v1, %s2808_s20  ;;  %2227 = vrot.lane.b32.xlu0 %v3888_v44, %s2813_s17  ;;  %v2259_v2 = vpack.c.bf16 %v3909_v1, %v3888_v44 }
 0x46b   : > { %v2260_v22 = vpack.c.bf16 %v3913_v19, %v3911_v16 }
 0x46e   : > { %2165 = vrot.lane.b32.xlu1 %v3909_v1, %s2810_s22  ;;  %2263 = vrot.lane.b32.xlu0 %v3888_v44, %s4169_s15 }
 0x472   : > { %2197 = vrot.lane.b32.xlu1 %v3909_v1, %s2812_s16  ;;  %2295 = vrot.lane.b32.xlu0 %v3888_v44, %s4170_s24 }
 0x476   : > { %2229 = vrot.lane.b32.xlu1 %v3909_v1, %s2813_s17  ;;  %2327 = vrot.lane.b32.xlu0 %v3888_v44, %s4171_s26 }
 0x47a   : > { %2265 = vrot.lane.b32.xlu1 %v3909_v1, %s4169_s15  ;;  %2135 = vrot.lane.b32.xlu0 %v3911_v16, %s2808_s20 }
 0x47e   : > { %2297 = vrot.lane.b32.xlu1 %v3909_v1, %s4170_s24  ;;  %2167 = vrot.lane.b32.xlu0 %v3911_v16, %s2810_s22 }
 0x482   : > { %2329 = vrot.lane.b32.xlu1 %v3909_v1, %s4171_s26  ;;  %2199 = vrot.lane.b32.xlu0 %v3911_v16, %s2812_s16 }
 0x486   : > { %2137 = vrot.lane.b32.xlu1 %v3913_v19, %s2808_s20  ;;  %2231 = vrot.lane.b32.xlu0 %v3911_v16, %s2813_s17 }
 0x48a   : > { %2169 = vrot.lane.b32.xlu1 %v3913_v19, %s2810_s22  ;;  %2359 = vrot.lane.b32.xlu0 %v3888_v44, %s4172_s25  ;;  %v2609_v44 = vld [vmem:[%s4147_s1 + $0x10] sm:$0x3] }
 0x48e   : > { %2201 = vrot.lane.b32.xlu1 %v3913_v19, %s2812_s16  ;;  %2267 = vrot.lane.b32.xlu0 %v3911_v16, %s4169_s15 }
 0x492   : > { %2233 = vrot.lane.b32.xlu1 %v3913_v19, %s2813_s17  ;;  %2299 = vrot.lane.b32.xlu0 %v3911_v16, %s4170_s24 }
 0x496   : > { %2361 = vrot.lane.b32.xlu1 %v3909_v1, %s4172_s25  ;;  %2331 = vrot.lane.b32.xlu0 %v3911_v16, %s4171_s26 }
 0x49a   : > { %2269 = vrot.lane.b32.xlu1 %v3913_v19, %s4169_s15  ;;  %2363 = vrot.lane.b32.xlu0 %v3911_v16, %s4172_s25 }
 0x49e   : > { %2301 = vrot.lane.b32.xlu1 %v3913_v19, %s4170_s24  ;;  %s487_s24 = scalar_lea.vmem %s4160_s14, %s2617_s21 }
 0x4a2   : > { %2333 = vrot.lane.b32.xlu1 %v3913_v19, %s4171_s26 }
 0x4a6   : > { %2365 = vrot.lane.b32.xlu1 %v3913_v19, %s4172_s25 }
 0x4d0   : > { %v2132_v24 = vpop.permute.xlu0 %2131 }
 0x4d4   : > { %v2164_v12 = vpop.permute.xlu0 %2163 }
 0x4d8   : > { %v2196_v13 = vpop.permute.xlu0 %2195 }
 0x4dc   : > { %v2134_v25 = vpop.permute.xlu1 %2133  ;;  %v3985_v39 = vpop.permute.xlu0 %2227 }
 0x4e0   : > { %v2166_v63 = vpop.permute.xlu1 %2165  ;;  %v3987_v4 = vpop.permute.xlu0 %2263 }
 0x4e4   : > { %v2198_v29 = vpop.permute.xlu1 %2197  ;;  %v3989_v14 = vpop.permute.xlu0 %2295 }
 0x4e8   : > { %v3991_v30 = vpop.permute.xlu1 %2229  ;;  %v3993_v43 = vpop.permute.xlu0 %2327 }
 0x4ec   : > { %v3995_v37 = vpop.permute.xlu1 %2265  ;;  %v2136_v15 = vpop.permute.xlu0 %2135 }
 0x4ed   : > { %v2139_v42 = vsel %vm539_vm1, %v2132_v24, %v2136_v15  ;;  %v2141_v38 = vsel %vm539_vm1, %v2136_v15, %v2132_v24  ;;  %v2244_v24 = vrot.slane %v2605_v62, %v3085_v27 }
 0x4ee   : > { %v2155_v9 = vmul.f32 %v2148_v8, %v2141_v38  ;;  %v2156_v50 = vmul.f32 %v2152_v40, %v2139_v42 }
 0x4f0   : > { %v3997_v31 = vpop.permute.xlu1 %2297  ;;  %v2168_v34 = vpop.permute.xlu0 %2167 }
 0x4f1   : > { %v2171_v52 = vsel %vm632_vm3, %v2164_v12, %v2168_v34  ;;  %v2173_v53 = vsel %vm632_vm3, %v2168_v34, %v2164_v12  ;;  %v2248_v12 = vrot.slane %v2605_v62, %v3091_v28 }
 0x4f2   : > { %v2187_v60 = vmul.f32 %v2180_v45, %v2173_v53  ;;  %v2188_v61 = vmul.f32 %v2184_v46, %v2171_v52 }
 0x4f4   : > { %v4002_v36 = vpop.permute.xlu1 %2329  ;;  %v2200_v49 = vpop.permute.xlu0 %2199 }
 0x4f5   : > { %v2203_v11 = vsel %vm726_vm5, %v2196_v13, %v2200_v49  ;;  %v2205_v32 = vsel %vm726_vm5, %v2200_v49, %v2196_v13 }
 0x4f6   : > { %v2219_v15 = vmul.f32 %v2212_v56, %v2205_v32  ;;  %v2220_v34 = vmul.f32 %v2216_v57, %v2203_v11 }
 0x4f8   : > { %v2138_v55 = vpop.permute.xlu1 %2137  ;;  %v2232_v17 = vpop.permute.xlu0 %2231 }
 0x4f9   : > { %v2140_v47 = vsel %vm539_vm1, %v2134_v25, %v2138_v55  ;;  %v2142_v48 = vsel %vm539_vm1, %v2138_v55, %v2134_v25  ;;  %v2235_v13 = vsel %vm820_vm6, %v3985_v39, %v2232_v17  ;;  %v2237_v49 = vsel %vm820_vm6, %v2232_v17, %v3985_v39  ;;  %v2606_v39 = vld [vmem:[%s4147_s1 + $0xa] sm:$0x3] }
 0x4fa   : > { %v2157_v5 = vmul.f32 %v2148_v8, %v2142_v48  ;;  %v2158_v20 = vmul.f32 %v2152_v40, %v2140_v47 }
 0x4fc   : > { %v2159_v21 = vpack.c.bf16 %v2157_v5, %v2155_v9  ;;  %v2170_v54 = vpop.permute.xlu1 %2169  ;;  %v4026_v18 = vpop.permute.xlu0 %2359  ;;  %v2160_v6 = vpack.c.bf16 %v2158_v20, %v2156_v50  ;;  %v2280_v5 = vrot.slane %v2606_v39, %v3085_v27  ;;  %v2284_v20 = vrot.slane %v2606_v39, %v3091_v28 }
 0x4fd   : > { %v2172_v58 = vsel %vm632_vm3, %v2166_v63, %v2170_v54  ;;  %v2174_v59 = vsel %vm632_vm3, %v2170_v54, %v2166_v63 }
 0x4fe   : > { %v2189_v7 = vmul.f32 %v2180_v45, %v2174_v59  ;;  %v2190_v10 = vmul.f32 %v2184_v46, %v2172_v58  ;;  %2421 = vmatprep.subr.bf16.mxu0 %v2160_v6  ;;  %v2251_v45 = vmul.f32 %v2244_v24, %v2237_v49  ;;  %v2252_v46 = vmul.f32 %v2248_v12, %v2235_v13  ;;  %v2608_v59 = vld [vmem:[%s4147_s1 + $0xe] sm:$0x3] }
 0x4ff   : > { %2422 = vmatpush1.bf16.msra.mxu0 %v2159_v21  ;;  %v2348_v11 = vrot.slane %v2608_v59, %v3091_v28 }
 0x500   : > { %v2191_v33 = vpack.c.bf16 %v2189_v7, %v2187_v60  ;;  %v2202_v3 = vpop.permute.xlu1 %2201  ;;  %v2192_v23 = vpack.c.bf16 %v2190_v10, %v2188_v61  ;;  %v2268_v40 = vpop.permute.xlu0 %2267  ;;  %v2344_v10 = vrot.slane %v2608_v59, %v3085_v27 }
 0x501   : > { %v2204_v25 = vsel %vm726_vm5, %v2198_v29, %v2202_v3  ;;  %v2206_v63 = vsel %vm726_vm5, %v2202_v3, %v2198_v29  ;;  %v2271_v52 = vsel %vm930_vm0, %v3987_v4, %v2268_v40  ;;  %v2273_v53 = vsel %vm930_vm0, %v2268_v40, %v3987_v4 }
 0x502   : > { %v2221_v35 = vmul.f32 %v2212_v56, %v2206_v63  ;;  %v2222_v8 = vmul.f32 %v2216_v57, %v2204_v25  ;;  %2423 = vmatprep.subr.bf16.mxu0 %v2192_v23  ;;  %v2287_v58 = vmul.f32 %v2280_v5, %v2271_v52  ;;  %v2288_v4 = vmul.f32 %v2284_v20, %v2273_v53 }
 0x503   : > { %2424 = vmatpush1.bf16.msra.mxu0 %v2191_v33 }
 0x504   : > { %v2223_v41 = vpack.c.bf16 %v2221_v35, %v2219_v15  ;;  %v2234_v42 = vpop.permute.xlu1 %2233  ;;  %v2224_v38 = vpack.c.bf16 %v2222_v8, %v2220_v34  ;;  %v2300_v9 = vpop.permute.xlu0 %2299  ;;  %v2376_v15 = vrot.slane %v2609_v44, %v3085_v27  ;;  %v2380_v34 = vrot.slane %v2609_v44, %v3091_v28 }
 0x505   : > { %v2236_v29 = vsel %vm820_vm6, %v3991_v30, %v2234_v42  ;;  %v2238_v55 = vsel %vm820_vm6, %v2234_v42, %v3991_v30  ;;  %v2607_v30 = vld [vmem:[%s4147_s1 + $0xc] sm:$0x3]  ;;  %v2303_v60 = vsel %vm1024_vm2, %v3989_v14, %v2300_v9  ;;  %v2305_v61 = vsel %vm1024_vm2, %v2300_v9, %v3989_v14 }
 0x506   : > { %v2253_v47 = vmul.f32 %v2244_v24, %v2238_v55  ;;  %v2254_v48 = vmul.f32 %v2248_v12, %v2236_v29  ;;  %2425 = vmatprep.subr.bf16.mxu0 %v2224_v38  ;;  %v2312_v54 = vrot.slane %v2607_v30, %v3085_v27  ;;  %v2316_v6 = vrot.slane %v2607_v30, %v3091_v28 }
 0x507   : > { %2426 = vmatpush1.bf16.msra.mxu0 %v2223_v41 }
 0x508   : > { %v2255_v17 = vpack.c.bf16 %v2253_v47, %v2251_v45  ;;  %v2362_v50 = vpop.permute.xlu1 %2361  ;;  %v2256_v51 = vpack.c.bf16 %v2254_v48, %v2252_v46  ;;  %v2332_v16 = vpop.permute.xlu0 %2331  ;;  %v2319_v14 = vmul.f32 %v2312_v54, %v2303_v60  ;;  %v2320_v3 = vmul.f32 %v2316_v6, %v2305_v61 }
 0x509   : > { %v2335_v23 = vsel %vm1118_vm4, %v3993_v43, %v2332_v16  ;;  %v2337_v24 = vsel %vm1118_vm4, %v2332_v16, %v3993_v43 }
 0x50a   : > { %2427 = vmatprep.subr.bf16.mxu0 %v2256_v51  ;;  %v2351_v40 = vmul.f32 %v2344_v10, %v2335_v23  ;;  %v2352_v13 = vmul.f32 %v2348_v11, %v2337_v24 }
 0x50b   : > { %2428 = vmatpush1.bf16.msra.mxu0 %v2255_v17  ;;  %v2411_v17 = vld [vmem:[%s4159_s13 + $0x8] sm:$0xff] }
 0x50c   : > { %v2270_v21 = vpop.permute.xlu1 %2269  ;;  %2429 = vmatprep.subr.bf16.mxu0 %v2260_v22  ;;  %v2364_v12 = vpop.permute.xlu0 %2363 }
 0x50d   : > { %v2272_v56 = vsel %vm930_vm0, %v3995_v37, %v2270_v21  ;;  %v2274_v57 = vsel %vm930_vm0, %v2270_v21, %v3995_v37  ;;  %v2367_v41 = vsel %vm1212_vm7, %v4026_v18, %v2364_v12  ;;  %v2369_v27 = vsel %vm1212_vm7, %v2364_v12, %v4026_v18 }
 0x50e   : > { %v2289_v19 = vmul.f32 %v2280_v5, %v2272_v56  ;;  %v2290_v22 = vmul.f32 %v2284_v20, %v2274_v57  ;;  %v2383_v55 = vmul.f32 %v2376_v15, %v2367_v41  ;;  %v2384_v45 = vmul.f32 %v2380_v34, %v2369_v27 }
 0x50f   : > { %2430 = vmatpush1.bf16.msra.mxu0 %v2259_v2  ;;  %v2610_v18 = vcombine.low %v3976_v0, %v3976_v0 }
 0x510   : > { %v2291_v37 = vpack.c.bf16 %v2289_v19, %v2287_v58  ;;  %v2302_v62 = vpop.permute.xlu1 %2301  ;;  %v2292_v7 = vpack.c.bf16 %v2290_v22, %v2288_v4 }
 0x511   : > { %v2304_v32 = vsel %vm1024_vm2, %v3997_v31, %v2302_v62  ;;  %v2306_v33 = vsel %vm1024_vm2, %v2302_v62, %v3997_v31 }
 0x512   : > { %v2321_v1 = vmul.f32 %v2312_v54, %v2304_v32  ;;  %v2322_v2 = vmul.f32 %v2316_v6, %v2306_v33  ;;  %2431 = vmatprep.subr.bf16.mxu0 %v2292_v7 }
 0x513   : > { %2432 = vmatpush1.bf16.msra.mxu0 %v2291_v37 }
 0x514   : > { %v2323_v31 = vpack.c.bf16 %v2321_v1, %v2319_v14  ;;  %v2334_v25 = vpop.permute.xlu1 %2333  ;;  %v2324_v63 = vpack.c.bf16 %v2322_v2, %v2320_v3 }
 0x515   : > { %v2336_v35 = vsel %vm1118_vm4, %v4002_v36, %v2334_v25  ;;  %v2338_v8 = vsel %vm1118_vm4, %v2334_v25, %v4002_v36 }
 0x516   : > { %v2353_v43 = vmul.f32 %v2344_v10, %v2336_v35  ;;  %v2354_v49 = vmul.f32 %v2348_v11, %v2338_v8  ;;  %2433 = vmatprep.subr.bf16.mxu0 %v2324_v63 }
 0x517   : > { %2434 = vmatpush1.bf16.msra.mxu0 %v2323_v31 }
 0x518   : > { %v2355_v28 = vpack.c.bf16 %v2353_v43, %v2351_v40  ;;  %v2366_v42 = vpop.permute.xlu1 %2365  ;;  %v2356_v38 = vpack.c.bf16 %v2354_v49, %v2352_v13 }
 0x519   : > { %v2368_v36 = vsel %vm1212_vm7, %v2362_v50, %v2366_v42  ;;  %v2370_v29 = vsel %vm1212_vm7, %v2366_v42, %v2362_v50 }
 0x51a   : > { %v2385_v46 = vmul.f32 %v2376_v15, %v2368_v36  ;;  %v2386_v47 = vmul.f32 %v2380_v34, %v2370_v29  ;;  %2435 = vmatprep.subr.bf16.mxu0 %v2356_v38 }
 0x51b   : > { %2436 = vmatpush1.bf16.msra.mxu0 %v2355_v28 }
 0x51c   : > { %v2387_v48 = vpack.c.bf16 %v2385_v46, %v2383_v55  ;;  %v2388_v39 = vpack.c.bf16 %v2386_v47, %v2384_v45 }
 0x51e   : > { %2437 = vmatprep.subr.bf16.mxu0 %v2388_v39 }
 0x51f   : > { %2438 = vmatpush1.bf16.msra.mxu0 %v2387_v48 }
 0x522   : > { %2454 = vmatmul.mubr.bf16.vlgmr.msra.gmra.mrb[16].mxu0 %v2610_v18 }
 0x5f5   : > { %v2455_v9 = vpop.f32.mrb[16].mxu0 }
 0x5f6   : > { %v2456_v50 = vadd.f32 %v2455_v9, %v2410_v26  ;;  %v2457_v51 = vpop.f32.mrb[17].mxu0 }
 0x5f7   : > { %v2458_v5 = vadd.f32 %v2457_v51, %v2411_v17  ;;  %v2459_v0 = vpop.f32.mrb[18].mxu0 }
 0x5f8   : > { %2462 = vst [vmem:[%s487_s24] sm:$0xff] %v2456_v50  ;;  %v2460_v20 = vpop.f32.mrb[19].mxu0 }
 0x5f9   : > { %2463 = vst [vmem:[%s487_s24 + $0x8] sm:$0xff] %v2458_v5 }
 0x5fa PF: > { %s24_s29 = sadd.s32 1, %s2805_s29  }
 0x5fb   : > { %p21_p4 = scmp.ge.s32.totalorder %s24_s29, 4  }
 0x5fd   :  { %23 = sbr.rel (!%p21_p4) target bundleno = 1 (0x1), region = 119 }

</bundles_post_ra>
